<compile_context>
chip_gen: v6e
topology: v6e:2x2x1
jax: 0.10.0
libtpu: 0.0.40
codegen_flags: <defaults>
</compile_context>

<pallas_src>
import numpy as np
import jax
import jax.numpy as jnp
from jax import lax
from jax.experimental import pallas as pl
from jax.experimental.pallas import tpu as pltpu

# ------------------------- model hyper-parameters ---------------------------
B, S, H, FF, NH, L = 2, 8, 32, 64, 2, 2     # batch, seq, hidden, ffn, heads, layers
HD = H // NH                                # head dim
BS = B * S                                  # batch folded into rows
V = 100                                     # vocab size
NUM_LABELS = 5                              # classifier labels
LN_EPS = 1e-5

# ----------------------------- slab layouts ---------------------------------
WPAD = 3 * H                                # slab lane width (96)

# weight slab (bf16): per-layer block of rows [wqkv | wo | w1 | w2], then wp, wc
W_LAYER = 3 * H + FF                        # 160 rows per layer
W_QKV, W_WO, W_W1, W_W2 = 0, H, 2 * H, 3 * H
WP_OFF = L * W_LAYER
WC_OFF = WP_OFF + H
W_ROWS = WC_OFF + H                         # 384

# bias/LN slab (f32): one parameter vector per row, zero-padded to WPAD lanes
R_EMB_G, R_EMB_B = 0, 1
B_LAYER = 8
R_BQKV, R_BO, R_LN1G, R_LN1B, R_B1, R_B2, R_LN2G, R_LN2B = range(B_LAYER)
R_BP = 2 + L * B_LAYER
R_BC = R_BP + 1
B_ROWS = R_BC + 1                           # 20

# head-major column permutation for the fused QKV weight/bias: [q0|k0|v0|q1|k1|v1]
_HEAD_MAJOR_PERM = np.concatenate([
    np.concatenate([np.arange(HD) + h * HD,
                    np.arange(HD) + H + h * HD,
                    np.arange(HD) + 2 * H + h * HD])
    for h in range(NH)
])


def _layernorm(x, g, b):
    mu = jnp.mean(x, axis=-1, keepdims=True)
    var = jnp.mean(jnp.square(x - mu), axis=-1, keepdims=True)
    return (x - mu) * lax.rsqrt(var + LN_EPS) * g + b


# ------------------------------ Pallas kernel -------------------------------
def encoder_cls_kernel(x_ref, maskb_ref, w_ref, b_ref, out_ref):
    # Whole batch handled in one shot: x is the (B*S, H) activation slab (f32).
    mask_bias = maskb_ref[...]                       # (BS, BS) f32, hoisted
    scale = jnp.float32(1.0 / (HD ** 0.5))           # hoisted out of loops

    def brow(r, n):                                  # (1, n) f32 bias/LN row
        return b_ref[r:r + 1, 0:n]

    x = _layernorm(x_ref[...], brow(R_EMB_G, H), brow(R_EMB_B, H))

    for l in range(L):                               # static unroll over layers (L=2)
        lw = l * W_LAYER                             # weight-slab row base
        lb = 2 + l * B_LAYER                         # bias-slab row base
        x_bf = x.astype(jnp.bfloat16)

        # fused, head-major QKV: one (BS,H)@(H,3H) MXU pass
        qkv = jnp.dot(x_bf, w_ref[lw + W_QKV: lw + W_QKV + H, :],
                      preferred_element_type=jnp.float32) + brow(lb + R_BQKV, 3 * H)

        attn = jnp.zeros((BS, H), jnp.float32)
        for h in range(NH):                          # static unroll over heads (NH=2)
            win = qkv[:, h * 3 * HD:(h + 1) * 3 * HD]     # contiguous 48-lane window
            qh = win[:, 0:HD].astype(jnp.bfloat16)
            kh = win[:, HD:2 * HD].astype(jnp.bfloat16)
            vh = win[:, 2 * HD:3 * HD].astype(jnp.bfloat16)
            # contract last dims of q and k directly (no explicit k transpose)
            scores = lax.dot_general(qh, kh, (((1,), (1,)), ((), ())),
                                     preferred_element_type=jnp.float32)  # (BS, BS)
            scores = scores * scale + mask_bias
            # explicit softmax: divide on the EUP via approx reciprocal
            m = jnp.max(scores, axis=-1, keepdims=True)
            p = jnp.exp(scores - m)
            denom = jnp.sum(p, axis=-1, keepdims=True)
            probs = (p * pl.reciprocal(denom, approx=True)).astype(jnp.bfloat16)
            ctx_h = jnp.dot(probs, vh, preferred_element_type=jnp.float32)  # (BS, HD)
            # fold W_O per head -> no lane-dim concatenate of ctx chunks
            wo_h = w_ref[lw + W_WO + h * HD: lw + W_WO + (h + 1) * HD, 0:H]
            attn = attn + jnp.dot(ctx_h.astype(jnp.bfloat16), wo_h,
                                  preferred_element_type=jnp.float32)
        attn = attn + brow(lb + R_BO, H)
        x = _layernorm(x + attn, brow(lb + R_LN1G, H), brow(lb + R_LN1B, H))

        hmid = jnp.dot(x.astype(jnp.bfloat16), w_ref[lw + W_W1: lw + W_W1 + H, 0:FF],
                       preferred_element_type=jnp.float32) + brow(lb + R_B1, FF)
        # TODO(synk): HF xlm-roberta uses exact erf GELU; the tanh approximation is
        # kept because it lowers cleanly in Mosaic (difference is ~1e-3 level).
        hmid = jax.nn.gelu(hmid, approximate=True)
        ffn = jnp.dot(hmid.astype(jnp.bfloat16), w_ref[lw + W_W2: lw + W_W2 + FF, 0:H],
                      preferred_element_type=jnp.float32) + brow(lb + R_B2, H)
        x = _layernorm(x + ffn, brow(lb + R_LN2G, H), brow(lb + R_LN2B, H))

    # pooler: gather CLS rows (b*S) with an in-kernel one-hot selection matmul (MXU),
    # then tanh(W_p @ h[CLS] + b_p) for the whole batch at once.
    row_ids = lax.broadcasted_iota(jnp.int32, (B, BS), 1)
    cls_ids = lax.broadcasted_iota(jnp.int32, (B, BS), 0) * S
    cls_sel = (row_ids == cls_ids).astype(jnp.bfloat16)          # (B, BS) one-hot
    cls = jnp.dot(cls_sel, x.astype(jnp.bfloat16),
                  preferred_element_type=jnp.float32)            # (B, H)
    pooled = jnp.tanh(
        jnp.dot(cls.astype(jnp.bfloat16), w_ref[WP_OFF:WP_OFF + H, 0:H],
                preferred_element_type=jnp.float32) + brow(R_BP, H))
    # dropout(pooled): identity in eval/inference mode
    logits = jnp.dot(pooled.astype(jnp.bfloat16),
                     w_ref[WC_OFF:WC_OFF + H, 0:NUM_LABELS],
                     preferred_element_type=jnp.float32) + brow(R_BC, NUM_LABELS)
    out_ref[...] = logits                                        # single (B, NUM_LABELS) store


# ------------------------------ parameter init ------------------------------
def init_params(key):
    ks = iter(jax.random.split(key, 32))

    def w(shape, scale=0.02):
        return (scale * jax.random.normal(next(ks), shape)).astype(jnp.float32)

    p = {}
    p["word_emb"] = w((V, H))
    p["pos_emb"] = w((S, H))
    p["emb_g"] = jnp.ones((1, H), jnp.float32)
    p["emb_b"] = jnp.zeros((1, H), jnp.float32)
    # fused QKV weight/bias (standard [Q|K|V] order; head-major permute done in wrapper)
    p["wqkv"] = w((L, H, 3 * H)); p["bqkv"] = jnp.zeros((L, 3 * H), jnp.float32)
    p["wo"] = w((L, H, H)); p["bo"] = jnp.zeros((L, H), jnp.float32)
    p["ln1g"] = jnp.ones((L, H), jnp.float32); p["ln1b"] = jnp.zeros((L, H), jnp.float32)
    p["w1"] = w((L, H, FF)); p["b1"] = jnp.zeros((L, FF), jnp.float32)
    p["w2"] = w((L, FF, H)); p["b2"] = jnp.zeros((L, H), jnp.float32)
    p["ln2g"] = jnp.ones((L, H), jnp.float32); p["ln2b"] = jnp.zeros((L, H), jnp.float32)
    p["wp"] = w((H, H)); p["bp"] = jnp.zeros((1, H), jnp.float32)
    p["wc"] = w((H, NUM_LABELS)); p["bc"] = jnp.zeros((1, NUM_LABELS), jnp.float32)
    return p


# ------------------------------ slab packing --------------------------------
def _pad_cols(a, width=WPAD):
    return jnp.pad(a, ((0, 0), (0, width - a.shape[-1])))


def _row(v, width=WPAD):
    return _pad_cols(v.reshape(1, -1), width)


def pack_slabs(params):
    wqkv_hm = params["wqkv"][:, :, _HEAD_MAJOR_PERM]       # head-major columns
    bqkv_hm = params["bqkv"][:, _HEAD_MAJOR_PERM]

    wblocks = []
    for l in range(L):
        wblocks.append(_pad_cols(wqkv_hm[l]))               # (H, 96)
        wblocks.append(_pad_cols(params["wo"][l]))           # (H, 96)
        wblocks.append(_pad_cols(params["w1"][l]))           # (H, 96)
        wblocks.append(_pad_cols(params["w2"][l]))           # (FF, 96)
    wblocks.append(_pad_cols(params["wp"]))                   # (H, 96)
    wblocks.append(_pad_cols(params["wc"]))                   # (H, 96)
    w_slab = jnp.concatenate(wblocks, axis=0).astype(jnp.bfloat16)   # (384, 96)

    brows = [_row(params["emb_g"][0]), _row(params["emb_b"][0])]
    for l in range(L):
        brows += [_row(bqkv_hm[l]), _row(params["bo"][l]),
                  _row(params["ln1g"][l]), _row(params["ln1b"][l]),
                  _row(params["b1"][l]), _row(params["b2"][l]),
                  _row(params["ln2g"][l]), _row(params["ln2b"][l])]
    brows += [_row(params["bp"][0]), _row(params["bc"][0])]
    b_slab = jnp.concatenate(brows, axis=0).astype(jnp.float32)      # (20, 96)
    return w_slab, b_slab


# --------------------------------- wrapper ----------------------------------
@jax.jit
def custom_model_forward(params, input_ids, attention_mask):
    # embedding lookup + positional embeddings (glue, plain JAX)
    x = params["word_emb"][input_ids] + params["pos_emb"][None, :, :]
    x = x.reshape(BS, H).astype(jnp.float32)              # f32 into the kernel

    # additive attention mask over the folded (B*S) row axis:
    #   key-padding mask + block-diagonal mask keeping attention within each batch row
    key_valid = attention_mask.astype(jnp.float32).reshape(BS)
    batch_ids = jnp.repeat(jnp.arange(B), S)
    allowed = (batch_ids[:, None] == batch_ids[None, :]) & (key_valid[None, :] > 0)
    mask_bias = jnp.where(allowed, 0.0, -1e9).astype(jnp.float32)     # (BS, BS)

    w_slab, b_slab = pack_slabs(params)                    # 2 contiguous parameter slabs

    vmem = pl.BlockSpec(memory_space=pltpu.MemorySpace.VMEM)
    logits = pl.pallas_call(
        encoder_cls_kernel,
        out_shape=jax.ShapeDtypeStruct((B, NUM_LABELS), jnp.float32),
        in_specs=[vmem, vmem, vmem, vmem],                 # 4 refs, fully VMEM-resident
        out_specs=vmem,                                    # no grid -> no pipeline machinery
    )(x, mask_bias, w_slab, b_slab)
    return logits                                          # (B, NUM_LABELS)


if __name__ == "__main__":
    key = jax.random.PRNGKey(0)
    pkey, ikey = jax.random.split(key)
    params = init_params(pkey)

    input_ids = jax.random.randint(ikey, (B, S), 0, V, dtype=jnp.int32)
    lengths = jnp.array([S, S - 3], dtype=jnp.int32)          # second sequence padded
    attention_mask = (jnp.arange(S)[None, :] < lengths[:, None]).astype(jnp.int32)

    logits = custom_model_forward(params, input_ids, attention_mask)
    jax.block_until_ready(logits)
    assert logits.shape == (B, NUM_LABELS)
    print("KERNEL_OK")
</pallas_src>

<mosaic_0001>
module attributes {stable_mosaic.version = 11 : i64} {
  func.func @encoder_cls_kernel(%arg0: memref<16x32xf32, #tpu.memory_space<vmem>>, %arg1: memref<16x16xf32, #tpu.memory_space<vmem>>, %arg2: memref<384x96xbf16, #tpu.memory_space<vmem>>, %arg3: memref<20x96xf32, #tpu.memory_space<vmem>>, %arg4: memref<2x5xf32, #tpu.memory_space<vmem>>) attributes {dimension_semantics = [], scalar_prefetch = 0 : i64, scratch_operands = 0 : i64, tpu.core_type = #tpu.core_type<tc>} {
    %c0 = arith.constant 0 : index
    %c0_0 = arith.constant 0 : index
    %0 = vector.load %arg1[%c0, %c0_0] : memref<16x16xf32, #tpu.memory_space<vmem>>, vector<16x16xf32>
    %c0_1 = arith.constant 0 : index
    %c0_2 = arith.constant 0 : index
    %1 = vector.load %arg0[%c0_1, %c0_2] : memref<16x32xf32, #tpu.memory_space<vmem>>, vector<16x32xf32>
    %c0_3 = arith.constant 0 : index
    %c0_4 = arith.constant 0 : index
    %2 = vector.load %arg3[%c0_3, %c0_4] : memref<20x96xf32, #tpu.memory_space<vmem>>, vector<1x32xf32>
    %c1 = arith.constant 1 : index
    %c0_5 = arith.constant 0 : index
    %3 = vector.load %arg3[%c1, %c0_5] : memref<20x96xf32, #tpu.memory_space<vmem>>, vector<1x32xf32>
    %cst = arith.constant dense<0.000000e+00> : vector<16xf32>
    %4 = vector.multi_reduction <add>, %1, %cst [1] : vector<16x32xf32> to vector<16xf32>
    %5 = vector.shape_cast %4 : vector<16xf32> to vector<16x1xf32>
    %cst_6 = arith.constant 3.200000e+01 : f32
    %6 = vector.broadcast %cst_6 : f32 to vector<16x1xf32>
    %7 = arith.divf %5, %6 : vector<16x1xf32>
    %8 = vector.broadcast %7 : vector<16x1xf32> to vector<16x32xf32>
    %9 = arith.subf %1, %8 : vector<16x32xf32>
    %10 = arith.mulf %9, %9 : vector<16x32xf32>
    %cst_7 = arith.constant dense<0.000000e+00> : vector<16xf32>
    %11 = vector.multi_reduction <add>, %10, %cst_7 [1] : vector<16x32xf32> to vector<16xf32>
    %12 = vector.shape_cast %11 : vector<16xf32> to vector<16x1xf32>
    %cst_8 = arith.constant 3.200000e+01 : f32
    %13 = vector.broadcast %cst_8 : f32 to vector<16x1xf32>
    %14 = arith.divf %12, %13 : vector<16x1xf32>
    %15 = vector.broadcast %7 : vector<16x1xf32> to vector<16x32xf32>
    %16 = arith.subf %1, %15 : vector<16x32xf32>
    %cst_9 = arith.constant 9.99999974E-6 : f32
    %17 = vector.broadcast %cst_9 : f32 to vector<16x1xf32>
    %18 = arith.addf %14, %17 : vector<16x1xf32>
    %19 = math.rsqrt %18 : vector<16x1xf32>
    %20 = vector.broadcast %19 : vector<16x1xf32> to vector<16x32xf32>
    %21 = arith.mulf %16, %20 : vector<16x32xf32>
    %22 = vector.broadcast %2 : vector<1x32xf32> to vector<16x32xf32>
    %23 = arith.mulf %21, %22 : vector<16x32xf32>
    %24 = vector.broadcast %3 : vector<1x32xf32> to vector<16x32xf32>
    %25 = arith.addf %23, %24 : vector<16x32xf32>
    %26 = arith.truncf %25 : vector<16x32xf32> to vector<16x32xbf16>
    %c0_10 = arith.constant 0 : index
    %c0_11 = arith.constant 0 : index
    %27 = vector.load %arg2[%c0_10, %c0_11] : memref<384x96xbf16, #tpu.memory_space<vmem>>, vector<32x96xbf16>
    %cst_12 = arith.constant dense<0.000000e+00> : vector<16x96xf32>
    %28 = tpu.matmul %26, %27, %cst_12 {dimension_numbers = #tpu.dot_dimension_numbers<[1], [0], [0], [1], [0, 0, 1, 1], [], []>} : vector<16x32xbf16>, vector<32x96xbf16>, vector<16x96xf32> -> vector<16x96xf32>
    %c2 = arith.constant 2 : index
    %c0_13 = arith.constant 0 : index
    %29 = vector.load %arg3[%c2, %c0_13] : memref<20x96xf32, #tpu.memory_space<vmem>>, vector<1x96xf32>
    %30 = vector.broadcast %29 : vector<1x96xf32> to vector<16x96xf32>
    %31 = arith.addf %28, %30 : vector<16x96xf32>
    %cst_14 = arith.constant 0.000000e+00 : f32
    %32 = vector.broadcast %cst_14 : f32 to vector<16x32xf32>
    %33 = vector.extract_strided_slice %31 {offsets = [0, 0], sizes = [16, 48], strides = [1, 1]} : vector<16x96xf32> to vector<16x48xf32>
    %34 = vector.extract_strided_slice %33 {offsets = [0, 0], sizes = [16, 16], strides = [1, 1]} : vector<16x48xf32> to vector<16x16xf32>
    %35 = arith.truncf %34 : vector<16x16xf32> to vector<16x16xbf16>
    %36 = vector.extract_strided_slice %33 {offsets = [0, 16], sizes = [16, 16], strides = [1, 1]} : vector<16x48xf32> to vector<16x16xf32>
    %37 = arith.truncf %36 : vector<16x16xf32> to vector<16x16xbf16>
    %38 = vector.extract_strided_slice %33 {offsets = [0, 32], sizes = [16, 16], strides = [1, 1]} : vector<16x48xf32> to vector<16x16xf32>
    %39 = arith.truncf %38 : vector<16x16xf32> to vector<16x16xbf16>
    %cst_15 = arith.constant dense<0.000000e+00> : vector<16x16xf32>
    %40 = tpu.matmul %35, %37, %cst_15 {dimension_numbers = #tpu.dot_dimension_numbers<[1], [1], [0], [0], [0, 0, 1, 0], [], []>} : vector<16x16xbf16>, vector<16x16xbf16>, vector<16x16xf32> -> vector<16x16xf32>
    %cst_16 = arith.constant 2.500000e-01 : f32
    %41 = vector.broadcast %cst_16 : f32 to vector<16x16xf32>
    %42 = arith.mulf %40, %41 : vector<16x16xf32>
    %43 = arith.addf %42, %0 : vector<16x16xf32>
    %cst_17 = arith.constant dense<0xFF800000> : vector<16xf32>
    %44 = vector.multi_reduction <maximumf>, %43, %cst_17 [1] : vector<16x16xf32> to vector<16xf32>
    %45 = vector.shape_cast %44 : vector<16xf32> to vector<16x1xf32>
    %46 = vector.broadcast %45 : vector<16x1xf32> to vector<16x16xf32>
    %47 = arith.subf %43, %46 : vector<16x16xf32>
    %48 = math.exp %47 : vector<16x16xf32>
    %cst_18 = arith.constant dense<0.000000e+00> : vector<16xf32>
    %49 = vector.multi_reduction <add>, %48, %cst_18 [1] : vector<16x16xf32> to vector<16xf32>
    %50 = vector.shape_cast %49 : vector<16xf32> to vector<16x1xf32>
    %51 = tpu.reciprocal %50 {approx = true} : vector<16x1xf32> -> vector<16x1xf32>
    %52 = vector.broadcast %51 : vector<16x1xf32> to vector<16x16xf32>
    %53 = arith.mulf %48, %52 : vector<16x16xf32>
    %54 = arith.truncf %53 : vector<16x16xf32> to vector<16x16xbf16>
    %cst_19 = arith.constant dense<0.000000e+00> : vector<16x16xf32>
    %55 = tpu.matmul %54, %39, %cst_19 {dimension_numbers = #tpu.dot_dimension_numbers<[1], [0], [0], [1], [0, 0, 1, 1], [], []>} : vector<16x16xbf16>, vector<16x16xbf16>, vector<16x16xf32> -> vector<16x16xf32>
    %c32 = arith.constant 32 : index
    %c0_20 = arith.constant 0 : index
    %56 = vector.load %arg2[%c32, %c0_20] : memref<384x96xbf16, #tpu.memory_space<vmem>>, vector<16x32xbf16>
    %57 = arith.truncf %55 : vector<16x16xf32> to vector<16x16xbf16>
    %cst_21 = arith.constant dense<0.000000e+00> : vector<16x32xf32>
    %58 = tpu.matmul %57, %56, %cst_21 {dimension_numbers = #tpu.dot_dimension_numbers<[1], [0], [0], [1], [0, 0, 1, 1], [], []>} : vector<16x16xbf16>, vector<16x32xbf16>, vector<16x32xf32> -> vector<16x32xf32>
    %59 = arith.addf %32, %58 : vector<16x32xf32>
    %60 = vector.extract_strided_slice %31 {offsets = [0, 48], sizes = [16, 48], strides = [1, 1]} : vector<16x96xf32> to vector<16x48xf32>
    %61 = vector.extract_strided_slice %60 {offsets = [0, 0], sizes = [16, 16], strides = [1, 1]} : vector<16x48xf32> to vector<16x16xf32>
    %62 = arith.truncf %61 : vector<16x16xf32> to vector<16x16xbf16>
    %63 = vector.extract_strided_slice %60 {offsets = [0, 16], sizes = [16, 16], strides = [1, 1]} : vector<16x48xf32> to vector<16x16xf32>
    %64 = arith.truncf %63 : vector<16x16xf32> to vector<16x16xbf16>
    %65 = vector.extract_strided_slice %60 {offsets = [0, 32], sizes = [16, 16], strides = [1, 1]} : vector<16x48xf32> to vector<16x16xf32>
    %66 = arith.truncf %65 : vector<16x16xf32> to vector<16x16xbf16>
    %cst_22 = arith.constant dense<0.000000e+00> : vector<16x16xf32>
    %67 = tpu.matmul %62, %64, %cst_22 {dimension_numbers = #tpu.dot_dimension_numbers<[1], [1], [0], [0], [0, 0, 1, 0], [], []>} : vector<16x16xbf16>, vector<16x16xbf16>, vector<16x16xf32> -> vector<16x16xf32>
    %cst_23 = arith.constant 2.500000e-01 : f32
    %68 = vector.broadcast %cst_23 : f32 to vector<16x16xf32>
    %69 = arith.mulf %67, %68 : vector<16x16xf32>
    %70 = arith.addf %69, %0 : vector<16x16xf32>
    %cst_24 = arith.constant dense<0xFF800000> : vector<16xf32>
    %71 = vector.multi_reduction <maximumf>, %70, %cst_24 [1] : vector<16x16xf32> to vector<16xf32>
    %72 = vector.shape_cast %71 : vector<16xf32> to vector<16x1xf32>
    %73 = vector.broadcast %72 : vector<16x1xf32> to vector<16x16xf32>
    %74 = arith.subf %70, %73 : vector<16x16xf32>
    %75 = math.exp %74 : vector<16x16xf32>
    %cst_25 = arith.constant dense<0.000000e+00> : vector<16xf32>
    %76 = vector.multi_reduction <add>, %75, %cst_25 [1] : vector<16x16xf32> to vector<16xf32>
    %77 = vector.shape_cast %76 : vector<16xf32> to vector<16x1xf32>
    %78 = tpu.reciprocal %77 {approx = true} : vector<16x1xf32> -> vector<16x1xf32>
    %79 = vector.broadcast %78 : vector<16x1xf32> to vector<16x16xf32>
    %80 = arith.mulf %75, %79 : vector<16x16xf32>
    %81 = arith.truncf %80 : vector<16x16xf32> to vector<16x16xbf16>
    %cst_26 = arith.constant dense<0.000000e+00> : vector<16x16xf32>
    %82 = tpu.matmul %81, %66, %cst_26 {dimension_numbers = #tpu.dot_dimension_numbers<[1], [0], [0], [1], [0, 0, 1, 1], [], []>} : vector<16x16xbf16>, vector<16x16xbf16>, vector<16x16xf32> -> vector<16x16xf32>
    %c48 = arith.constant 48 : index
    %c0_27 = arith.constant 0 : index
    %83 = vector.load %arg2[%c48, %c0_27] : memref<384x96xbf16, #tpu.memory_space<vmem>>, vector<16x32xbf16>
    %84 = arith.truncf %82 : vector<16x16xf32> to vector<16x16xbf16>
    %cst_28 = arith.constant dense<0.000000e+00> : vector<16x32xf32>
    %85 = tpu.matmul %84, %83, %cst_28 {dimension_numbers = #tpu.dot_dimension_numbers<[1], [0], [0], [1], [0, 0, 1, 1], [], []>} : vector<16x16xbf16>, vector<16x32xbf16>, vector<16x32xf32> -> vector<16x32xf32>
    %86 = arith.addf %59, %85 : vector<16x32xf32>
    %c3 = arith.constant 3 : index
    %c0_29 = arith.constant 0 : index
    %87 = vector.load %arg3[%c3, %c0_29] : memref<20x96xf32, #tpu.memory_space<vmem>>, vector<1x32xf32>
    %88 = vector.broadcast %87 : vector<1x32xf32> to vector<16x32xf32>
    %89 = arith.addf %86, %88 : vector<16x32xf32>
    %90 = arith.addf %25, %89 : vector<16x32xf32>
    %c4 = arith.constant 4 : index
    %c0_30 = arith.constant 0 : index
    %91 = vector.load %arg3[%c4, %c0_30] : memref<20x96xf32, #tpu.memory_space<vmem>>, vector<1x32xf32>
    %c5 = arith.constant 5 : index
    %c0_31 = arith.constant 0 : index
    %92 = vector.load %arg3[%c5, %c0_31] : memref<20x96xf32, #tpu.memory_space<vmem>>, vector<1x32xf32>
    %cst_32 = arith.constant dense<0.000000e+00> : vector<16xf32>
    %93 = vector.multi_reduction <add>, %90, %cst_32 [1] : vector<16x32xf32> to vector<16xf32>
    %94 = vector.shape_cast %93 : vector<16xf32> to vector<16x1xf32>
    %cst_33 = arith.constant 3.200000e+01 : f32
    %95 = vector.broadcast %cst_33 : f32 to vector<16x1xf32>
    %96 = arith.divf %94, %95 : vector<16x1xf32>
    %97 = vector.broadcast %96 : vector<16x1xf32> to vector<16x32xf32>
    %98 = arith.subf %90, %97 : vector<16x32xf32>
    %99 = arith.mulf %98, %98 : vector<16x32xf32>
    %cst_34 = arith.constant dense<0.000000e+00> : vector<16xf32>
    %100 = vector.multi_reduction <add>, %99, %cst_34 [1] : vector<16x32xf32> to vector<16xf32>
    %101 = vector.shape_cast %100 : vector<16xf32> to vector<16x1xf32>
    %cst_35 = arith.constant 3.200000e+01 : f32
    %102 = vector.broadcast %cst_35 : f32 to vector<16x1xf32>
    %103 = arith.divf %101, %102 : vector<16x1xf32>
    %104 = vector.broadcast %96 : vector<16x1xf32> to vector<16x32xf32>
    %105 = arith.subf %90, %104 : vector<16x32xf32>
    %cst_36 = arith.constant 9.99999974E-6 : f32
    %106 = vector.broadcast %cst_36 : f32 to vector<16x1xf32>
    %107 = arith.addf %103, %106 : vector<16x1xf32>
    %108 = math.rsqrt %107 : vector<16x1xf32>
    %109 = vector.broadcast %108 : vector<16x1xf32> to vector<16x32xf32>
    %110 = arith.mulf %105, %109 : vector<16x32xf32>
    %111 = vector.broadcast %91 : vector<1x32xf32> to vector<16x32xf32>
    %112 = arith.mulf %110, %111 : vector<16x32xf32>
    %113 = vector.broadcast %92 : vector<1x32xf32> to vector<16x32xf32>
    %114 = arith.addf %112, %113 : vector<16x32xf32>
    %115 = arith.truncf %114 : vector<16x32xf32> to vector<16x32xbf16>
    %c64 = arith.constant 64 : index
    %c0_37 = arith.constant 0 : index
    %116 = vector.load %arg2[%c64, %c0_37] : memref<384x96xbf16, #tpu.memory_space<vmem>>, vector<32x64xbf16>
    %cst_38 = arith.constant dense<0.000000e+00> : vector<16x64xf32>
    %117 = tpu.matmul %115, %116, %cst_38 {dimension_numbers = #tpu.dot_dimension_numbers<[1], [0], [0], [1], [0, 0, 1, 1], [], []>} : vector<16x32xbf16>, vector<32x64xbf16>, vector<16x64xf32> -> vector<16x64xf32>
    %c6 = arith.constant 6 : index
    %c0_39 = arith.constant 0 : index
    %118 = vector.load %arg3[%c6, %c0_39] : memref<20x96xf32, #tpu.memory_space<vmem>>, vector<1x64xf32>
    %119 = vector.broadcast %118 : vector<1x64xf32> to vector<16x64xf32>
    %120 = arith.addf %117, %119 : vector<16x64xf32>
    %121 = arith.mulf %120, %120 : vector<16x64xf32>
    %122 = arith.mulf %120, %121 : vector<16x64xf32>
    %cst_40 = arith.constant 4.471500e-02 : f32
    %123 = vector.broadcast %cst_40 : f32 to vector<16x64xf32>
    %124 = arith.mulf %123, %122 : vector<16x64xf32>
    %125 = arith.addf %120, %124 : vector<16x64xf32>
    %cst_41 = arith.constant 0.797884583 : f32
    %126 = vector.broadcast %cst_41 : f32 to vector<16x64xf32>
    %127 = arith.mulf %126, %125 : vector<16x64xf32>
    %128 = math.tanh %127 : vector<16x64xf32>
    %cst_42 = arith.constant 1.000000e+00 : f32
    %129 = vector.broadcast %cst_42 : f32 to vector<16x64xf32>
    %130 = arith.addf %129, %128 : vector<16x64xf32>
    %cst_43 = arith.constant 5.000000e-01 : f32
    %131 = vector.broadcast %cst_43 : f32 to vector<16x64xf32>
    %132 = arith.mulf %131, %130 : vector<16x64xf32>
    %133 = arith.mulf %120, %132 : vector<16x64xf32>
    %134 = arith.truncf %133 : vector<16x64xf32> to vector<16x64xbf16>
    %c96 = arith.constant 96 : index
    %c0_44 = arith.constant 0 : index
    %135 = vector.load %arg2[%c96, %c0_44] : memref<384x96xbf16, #tpu.memory_space<vmem>>, vector<64x32xbf16>
    %cst_45 = arith.constant dense<0.000000e+00> : vector<16x32xf32>
    %136 = tpu.matmul %134, %135, %cst_45 {dimension_numbers = #tpu.dot_dimension_numbers<[1], [0], [0], [1], [0, 0, 1, 1], [], []>} : vector<16x64xbf16>, vector<64x32xbf16>, vector<16x32xf32> -> vector<16x32xf32>
    %c7 = arith.constant 7 : index
    %c0_46 = arith.constant 0 : index
    %137 = vector.load %arg3[%c7, %c0_46] : memref<20x96xf32, #tpu.memory_space<vmem>>, vector<1x32xf32>
    %138 = vector.broadcast %137 : vector<1x32xf32> to vector<16x32xf32>
    %139 = arith.addf %136, %138 : vector<16x32xf32>
    %140 = arith.addf %114, %139 : vector<16x32xf32>
    %c8 = arith.constant 8 : index
    %c0_47 = arith.constant 0 : index
    %141 = vector.load %arg3[%c8, %c0_47] : memref<20x96xf32, #tpu.memory_space<vmem>>, vector<1x32xf32>
    %c9 = arith.constant 9 : index
    %c0_48 = arith.constant 0 : index
    %142 = vector.load %arg3[%c9, %c0_48] : memref<20x96xf32, #tpu.memory_space<vmem>>, vector<1x32xf32>
    %cst_49 = arith.constant dense<0.000000e+00> : vector<16xf32>
    %143 = vector.multi_reduction <add>, %140, %cst_49 [1] : vector<16x32xf32> to vector<16xf32>
    %144 = vector.shape_cast %143 : vector<16xf32> to vector<16x1xf32>
    %cst_50 = arith.constant 3.200000e+01 : f32
    %145 = vector.broadcast %cst_50 : f32 to vector<16x1xf32>
    %146 = arith.divf %144, %145 : vector<16x1xf32>
    %147 = vector.broadcast %146 : vector<16x1xf32> to vector<16x32xf32>
    %148 = arith.subf %140, %147 : vector<16x32xf32>
    %149 = arith.mulf %148, %148 : vector<16x32xf32>
    %cst_51 = arith.constant dense<0.000000e+00> : vector<16xf32>
    %150 = vector.multi_reduction <add>, %149, %cst_51 [1] : vector<16x32xf32> to vector<16xf32>
    %151 = vector.shape_cast %150 : vector<16xf32> to vector<16x1xf32>
    %cst_52 = arith.constant 3.200000e+01 : f32
    %152 = vector.broadcast %cst_52 : f32 to vector<16x1xf32>
    %153 = arith.divf %151, %152 : vector<16x1xf32>
    %154 = vector.broadcast %146 : vector<16x1xf32> to vector<16x32xf32>
    %155 = arith.subf %140, %154 : vector<16x32xf32>
    %cst_53 = arith.constant 9.99999974E-6 : f32
    %156 = vector.broadcast %cst_53 : f32 to vector<16x1xf32>
    %157 = arith.addf %153, %156 : vector<16x1xf32>
    %158 = math.rsqrt %157 : vector<16x1xf32>
    %159 = vector.broadcast %158 : vector<16x1xf32> to vector<16x32xf32>
    %160 = arith.mulf %155, %159 : vector<16x32xf32>
    %161 = vector.broadcast %141 : vector<1x32xf32> to vector<16x32xf32>
    %162 = arith.mulf %160, %161 : vector<16x32xf32>
    %163 = vector.broadcast %142 : vector<1x32xf32> to vector<16x32xf32>
    %164 = arith.addf %162, %163 : vector<16x32xf32>
    %165 = arith.truncf %164 : vector<16x32xf32> to vector<16x32xbf16>
    %c160 = arith.constant 160 : index
    %c0_54 = arith.constant 0 : index
    %166 = vector.load %arg2[%c160, %c0_54] : memref<384x96xbf16, #tpu.memory_space<vmem>>, vector<32x96xbf16>
    %cst_55 = arith.constant dense<0.000000e+00> : vector<16x96xf32>
    %167 = tpu.matmul %165, %166, %cst_55 {dimension_numbers = #tpu.dot_dimension_numbers<[1], [0], [0], [1], [0, 0, 1, 1], [], []>} : vector<16x32xbf16>, vector<32x96xbf16>, vector<16x96xf32> -> vector<16x96xf32>
    %c10 = arith.constant 10 : index
    %c0_56 = arith.constant 0 : index
    %168 = vector.load %arg3[%c10, %c0_56] : memref<20x96xf32, #tpu.memory_space<vmem>>, vector<1x96xf32>
    %169 = vector.broadcast %168 : vector<1x96xf32> to vector<16x96xf32>
    %170 = arith.addf %167, %169 : vector<16x96xf32>
    %cst_57 = arith.constant 0.000000e+00 : f32
    %171 = vector.broadcast %cst_57 : f32 to vector<16x32xf32>
    %172 = vector.extract_strided_slice %170 {offsets = [0, 0], sizes = [16, 48], strides = [1, 1]} : vector<16x96xf32> to vector<16x48xf32>
    %173 = vector.extract_strided_slice %172 {offsets = [0, 0], sizes = [16, 16], strides = [1, 1]} : vector<16x48xf32> to vector<16x16xf32>
    %174 = arith.truncf %173 : vector<16x16xf32> to vector<16x16xbf16>
    %175 = vector.extract_strided_slice %172 {offsets = [0, 16], sizes = [16, 16], strides = [1, 1]} : vector<16x48xf32> to vector<16x16xf32>
    %176 = arith.truncf %175 : vector<16x16xf32> to vector<16x16xbf16>
    %177 = vector.extract_strided_slice %172 {offsets = [0, 32], sizes = [16, 16], strides = [1, 1]} : vector<16x48xf32> to vector<16x16xf32>
    %178 = arith.truncf %177 : vector<16x16xf32> to vector<16x16xbf16>
    %cst_58 = arith.constant dense<0.000000e+00> : vector<16x16xf32>
    %179 = tpu.matmul %174, %176, %cst_58 {dimension_numbers = #tpu.dot_dimension_numbers<[1], [1], [0], [0], [0, 0, 1, 0], [], []>} : vector<16x16xbf16>, vector<16x16xbf16>, vector<16x16xf32> -> vector<16x16xf32>
    %cst_59 = arith.constant 2.500000e-01 : f32
    %180 = vector.broadcast %cst_59 : f32 to vector<16x16xf32>
    %181 = arith.mulf %179, %180 : vector<16x16xf32>
    %182 = arith.addf %181, %0 : vector<16x16xf32>
    %cst_60 = arith.constant dense<0xFF800000> : vector<16xf32>
    %183 = vector.multi_reduction <maximumf>, %182, %cst_60 [1] : vector<16x16xf32> to vector<16xf32>
    %184 = vector.shape_cast %183 : vector<16xf32> to vector<16x1xf32>
    %185 = vector.broadcast %184 : vector<16x1xf32> to vector<16x16xf32>
    %186 = arith.subf %182, %185 : vector<16x16xf32>
    %187 = math.exp %186 : vector<16x16xf32>
    %cst_61 = arith.constant dense<0.000000e+00> : vector<16xf32>
    %188 = vector.multi_reduction <add>, %187, %cst_61 [1] : vector<16x16xf32> to vector<16xf32>
    %189 = vector.shape_cast %188 : vector<16xf32> to vector<16x1xf32>
    %190 = tpu.reciprocal %189 {approx = true} : vector<16x1xf32> -> vector<16x1xf32>
    %191 = vector.broadcast %190 : vector<16x1xf32> to vector<16x16xf32>
    %192 = arith.mulf %187, %191 : vector<16x16xf32>
    %193 = arith.truncf %192 : vector<16x16xf32> to vector<16x16xbf16>
    %cst_62 = arith.constant dense<0.000000e+00> : vector<16x16xf32>
    %194 = tpu.matmul %193, %178, %cst_62 {dimension_numbers = #tpu.dot_dimension_numbers<[1], [0], [0], [1], [0, 0, 1, 1], [], []>} : vector<16x16xbf16>, vector<16x16xbf16>, vector<16x16xf32> -> vector<16x16xf32>
    %c192 = arith.constant 192 : index
    %c0_63 = arith.constant 0 : index
    %195 = vector.load %arg2[%c192, %c0_63] : memref<384x96xbf16, #tpu.memory_space<vmem>>, vector<16x32xbf16>
    %196 = arith.truncf %194 : vector<16x16xf32> to vector<16x16xbf16>
    %cst_64 = arith.constant dense<0.000000e+00> : vector<16x32xf32>
    %197 = tpu.matmul %196, %195, %cst_64 {dimension_numbers = #tpu.dot_dimension_numbers<[1], [0], [0], [1], [0, 0, 1, 1], [], []>} : vector<16x16xbf16>, vector<16x32xbf16>, vector<16x32xf32> -> vector<16x32xf32>
    %198 = arith.addf %171, %197 : vector<16x32xf32>
    %199 = vector.extract_strided_slice %170 {offsets = [0, 48], sizes = [16, 48], strides = [1, 1]} : vector<16x96xf32> to vector<16x48xf32>
    %200 = vector.extract_strided_slice %199 {offsets = [0, 0], sizes = [16, 16], strides = [1, 1]} : vector<16x48xf32> to vector<16x16xf32>
    %201 = arith.truncf %200 : vector<16x16xf32> to vector<16x16xbf16>
    %202 = vector.extract_strided_slice %199 {offsets = [0, 16], sizes = [16, 16], strides = [1, 1]} : vector<16x48xf32> to vector<16x16xf32>
    %203 = arith.truncf %202 : vector<16x16xf32> to vector<16x16xbf16>
    %204 = vector.extract_strided_slice %199 {offsets = [0, 32], sizes = [16, 16], strides = [1, 1]} : vector<16x48xf32> to vector<16x16xf32>
    %205 = arith.truncf %204 : vector<16x16xf32> to vector<16x16xbf16>
    %cst_65 = arith.constant dense<0.000000e+00> : vector<16x16xf32>
    %206 = tpu.matmul %201, %203, %cst_65 {dimension_numbers = #tpu.dot_dimension_numbers<[1], [1], [0], [0], [0, 0, 1, 0], [], []>} : vector<16x16xbf16>, vector<16x16xbf16>, vector<16x16xf32> -> vector<16x16xf32>
    %cst_66 = arith.constant 2.500000e-01 : f32
    %207 = vector.broadcast %cst_66 : f32 to vector<16x16xf32>
    %208 = arith.mulf %206, %207 : vector<16x16xf32>
    %209 = arith.addf %208, %0 : vector<16x16xf32>
    %cst_67 = arith.constant dense<0xFF800000> : vector<16xf32>
    %210 = vector.multi_reduction <maximumf>, %209, %cst_67 [1] : vector<16x16xf32> to vector<16xf32>
    %211 = vector.shape_cast %210 : vector<16xf32> to vector<16x1xf32>
    %212 = vector.broadcast %211 : vector<16x1xf32> to vector<16x16xf32>
    %213 = arith.subf %209, %212 : vector<16x16xf32>
    %214 = math.exp %213 : vector<16x16xf32>
    %cst_68 = arith.constant dense<0.000000e+00> : vector<16xf32>
    %215 = vector.multi_reduction <add>, %214, %cst_68 [1] : vector<16x16xf32> to vector<16xf32>
    %216 = vector.shape_cast %215 : vector<16xf32> to vector<16x1xf32>
    %217 = tpu.reciprocal %216 {approx = true} : vector<16x1xf32> -> vector<16x1xf32>
    %218 = vector.broadcast %217 : vector<16x1xf32> to vector<16x16xf32>
    %219 = arith.mulf %214, %218 : vector<16x16xf32>
    %220 = arith.truncf %219 : vector<16x16xf32> to vector<16x16xbf16>
    %cst_69 = arith.constant dense<0.000000e+00> : vector<16x16xf32>
    %221 = tpu.matmul %220, %205, %cst_69 {dimension_numbers = #tpu.dot_dimension_numbers<[1], [0], [0], [1], [0, 0, 1, 1], [], []>} : vector<16x16xbf16>, vector<16x16xbf16>, vector<16x16xf32> -> vector<16x16xf32>
    %c208 = arith.constant 208 : index
    %c0_70 = arith.constant 0 : index
    %222 = vector.load %arg2[%c208, %c0_70] : memref<384x96xbf16, #tpu.memory_space<vmem>>, vector<16x32xbf16>
    %223 = arith.truncf %221 : vector<16x16xf32> to vector<16x16xbf16>
    %cst_71 = arith.constant dense<0.000000e+00> : vector<16x32xf32>
    %224 = tpu.matmul %223, %222, %cst_71 {dimension_numbers = #tpu.dot_dimension_numbers<[1], [0], [0], [1], [0, 0, 1, 1], [], []>} : vector<16x16xbf16>, vector<16x32xbf16>, vector<16x32xf32> -> vector<16x32xf32>
    %225 = arith.addf %198, %224 : vector<16x32xf32>
    %c11 = arith.constant 11 : index
    %c0_72 = arith.constant 0 : index
    %226 = vector.load %arg3[%c11, %c0_72] : memref<20x96xf32, #tpu.memory_space<vmem>>, vector<1x32xf32>
    %227 = vector.broadcast %226 : vector<1x32xf32> to vector<16x32xf32>
    %228 = arith.addf %225, %227 : vector<16x32xf32>
    %229 = arith.addf %164, %228 : vector<16x32xf32>
    %c12 = arith.constant 12 : index
    %c0_73 = arith.constant 0 : index
    %230 = vector.load %arg3[%c12, %c0_73] : memref<20x96xf32, #tpu.memory_space<vmem>>, vector<1x32xf32>
    %c13 = arith.constant 13 : index
    %c0_74 = arith.constant 0 : index
    %231 = vector.load %arg3[%c13, %c0_74] : memref<20x96xf32, #tpu.memory_space<vmem>>, vector<1x32xf32>
    %cst_75 = arith.constant dense<0.000000e+00> : vector<16xf32>
    %232 = vector.multi_reduction <add>, %229, %cst_75 [1] : vector<16x32xf32> to vector<16xf32>
    %233 = vector.shape_cast %232 : vector<16xf32> to vector<16x1xf32>
    %cst_76 = arith.constant 3.200000e+01 : f32
    %234 = vector.broadcast %cst_76 : f32 to vector<16x1xf32>
    %235 = arith.divf %233, %234 : vector<16x1xf32>
    %236 = vector.broadcast %235 : vector<16x1xf32> to vector<16x32xf32>
    %237 = arith.subf %229, %236 : vector<16x32xf32>
    %238 = arith.mulf %237, %237 : vector<16x32xf32>
    %cst_77 = arith.constant dense<0.000000e+00> : vector<16xf32>
    %239 = vector.multi_reduction <add>, %238, %cst_77 [1] : vector<16x32xf32> to vector<16xf32>
    %240 = vector.shape_cast %239 : vector<16xf32> to vector<16x1xf32>
    %cst_78 = arith.constant 3.200000e+01 : f32
    %241 = vector.broadcast %cst_78 : f32 to vector<16x1xf32>
    %242 = arith.divf %240, %241 : vector<16x1xf32>
    %243 = vector.broadcast %235 : vector<16x1xf32> to vector<16x32xf32>
    %244 = arith.subf %229, %243 : vector<16x32xf32>
    %cst_79 = arith.constant 9.99999974E-6 : f32
    %245 = vector.broadcast %cst_79 : f32 to vector<16x1xf32>
    %246 = arith.addf %242, %245 : vector<16x1xf32>
    %247 = math.rsqrt %246 : vector<16x1xf32>
    %248 = vector.broadcast %247 : vector<16x1xf32> to vector<16x32xf32>
    %249 = arith.mulf %244, %248 : vector<16x32xf32>
    %250 = vector.broadcast %230 : vector<1x32xf32> to vector<16x32xf32>
    %251 = arith.mulf %249, %250 : vector<16x32xf32>
    %252 = vector.broadcast %231 : vector<1x32xf32> to vector<16x32xf32>
    %253 = arith.addf %251, %252 : vector<16x32xf32>
    %254 = arith.truncf %253 : vector<16x32xf32> to vector<16x32xbf16>
    %c224 = arith.constant 224 : index
    %c0_80 = arith.constant 0 : index
    %255 = vector.load %arg2[%c224, %c0_80] : memref<384x96xbf16, #tpu.memory_space<vmem>>, vector<32x64xbf16>
    %cst_81 = arith.constant dense<0.000000e+00> : vector<16x64xf32>
    %256 = tpu.matmul %254, %255, %cst_81 {dimension_numbers = #tpu.dot_dimension_numbers<[1], [0], [0], [1], [0, 0, 1, 1], [], []>} : vector<16x32xbf16>, vector<32x64xbf16>, vector<16x64xf32> -> vector<16x64xf32>
    %c14 = arith.constant 14 : index
    %c0_82 = arith.constant 0 : index
    %257 = vector.load %arg3[%c14, %c0_82] : memref<20x96xf32, #tpu.memory_space<vmem>>, vector<1x64xf32>
    %258 = vector.broadcast %257 : vector<1x64xf32> to vector<16x64xf32>
    %259 = arith.addf %256, %258 : vector<16x64xf32>
    %260 = arith.mulf %259, %259 : vector<16x64xf32>
    %261 = arith.mulf %259, %260 : vector<16x64xf32>
    %cst_83 = arith.constant 4.471500e-02 : f32
    %262 = vector.broadcast %cst_83 : f32 to vector<16x64xf32>
    %263 = arith.mulf %262, %261 : vector<16x64xf32>
    %264 = arith.addf %259, %263 : vector<16x64xf32>
    %cst_84 = arith.constant 0.797884583 : f32
    %265 = vector.broadcast %cst_84 : f32 to vector<16x64xf32>
    %266 = arith.mulf %265, %264 : vector<16x64xf32>
    %267 = math.tanh %266 : vector<16x64xf32>
    %cst_85 = arith.constant 1.000000e+00 : f32
    %268 = vector.broadcast %cst_85 : f32 to vector<16x64xf32>
    %269 = arith.addf %268, %267 : vector<16x64xf32>
    %cst_86 = arith.constant 5.000000e-01 : f32
    %270 = vector.broadcast %cst_86 : f32 to vector<16x64xf32>
    %271 = arith.mulf %270, %269 : vector<16x64xf32>
    %272 = arith.mulf %259, %271 : vector<16x64xf32>
    %273 = arith.truncf %272 : vector<16x64xf32> to vector<16x64xbf16>
    %c256 = arith.constant 256 : index
    %c0_87 = arith.constant 0 : index
    %274 = vector.load %arg2[%c256, %c0_87] : memref<384x96xbf16, #tpu.memory_space<vmem>>, vector<64x32xbf16>
    %cst_88 = arith.constant dense<0.000000e+00> : vector<16x32xf32>
    %275 = tpu.matmul %273, %274, %cst_88 {dimension_numbers = #tpu.dot_dimension_numbers<[1], [0], [0], [1], [0, 0, 1, 1], [], []>} : vector<16x64xbf16>, vector<64x32xbf16>, vector<16x32xf32> -> vector<16x32xf32>
    %c15 = arith.constant 15 : index
    %c0_89 = arith.constant 0 : index
    %276 = vector.load %arg3[%c15, %c0_89] : memref<20x96xf32, #tpu.memory_space<vmem>>, vector<1x32xf32>
    %277 = vector.broadcast %276 : vector<1x32xf32> to vector<16x32xf32>
    %278 = arith.addf %275, %277 : vector<16x32xf32>
    %279 = arith.addf %253, %278 : vector<16x32xf32>
    %c16 = arith.constant 16 : index
    %c0_90 = arith.constant 0 : index
    %280 = vector.load %arg3[%c16, %c0_90] : memref<20x96xf32, #tpu.memory_space<vmem>>, vector<1x32xf32>
    %c17 = arith.constant 17 : index
    %c0_91 = arith.constant 0 : index
    %281 = vector.load %arg3[%c17, %c0_91] : memref<20x96xf32, #tpu.memory_space<vmem>>, vector<1x32xf32>
    %cst_92 = arith.constant dense<0.000000e+00> : vector<16xf32>
    %282 = vector.multi_reduction <add>, %279, %cst_92 [1] : vector<16x32xf32> to vector<16xf32>
    %283 = vector.shape_cast %282 : vector<16xf32> to vector<16x1xf32>
    %cst_93 = arith.constant 3.200000e+01 : f32
    %284 = vector.broadcast %cst_93 : f32 to vector<16x1xf32>
    %285 = arith.divf %283, %284 : vector<16x1xf32>
    %286 = vector.broadcast %285 : vector<16x1xf32> to vector<16x32xf32>
    %287 = arith.subf %279, %286 : vector<16x32xf32>
    %288 = arith.mulf %287, %287 : vector<16x32xf32>
    %cst_94 = arith.constant dense<0.000000e+00> : vector<16xf32>
    %289 = vector.multi_reduction <add>, %288, %cst_94 [1] : vector<16x32xf32> to vector<16xf32>
    %290 = vector.shape_cast %289 : vector<16xf32> to vector<16x1xf32>
    %cst_95 = arith.constant 3.200000e+01 : f32
    %291 = vector.broadcast %cst_95 : f32 to vector<16x1xf32>
    %292 = arith.divf %290, %291 : vector<16x1xf32>
    %293 = vector.broadcast %285 : vector<16x1xf32> to vector<16x32xf32>
    %294 = arith.subf %279, %293 : vector<16x32xf32>
    %cst_96 = arith.constant 9.99999974E-6 : f32
    %295 = vector.broadcast %cst_96 : f32 to vector<16x1xf32>
    %296 = arith.addf %292, %295 : vector<16x1xf32>
    %297 = math.rsqrt %296 : vector<16x1xf32>
    %298 = vector.broadcast %297 : vector<16x1xf32> to vector<16x32xf32>
    %299 = arith.mulf %294, %298 : vector<16x32xf32>
    %300 = vector.broadcast %280 : vector<1x32xf32> to vector<16x32xf32>
    %301 = arith.mulf %299, %300 : vector<16x32xf32>
    %302 = vector.broadcast %281 : vector<1x32xf32> to vector<16x32xf32>
    %303 = arith.addf %301, %302 : vector<16x32xf32>
    %304 = tpu.iota {dimensions = array<i32: 1>} : vector<2x16xi32>
    %305 = tpu.iota {dimensions = array<i32: 0>} : vector<2x16xi32>
    %c8_i32 = arith.constant 8 : i32
    %306 = vector.broadcast %c8_i32 : i32 to vector<2x16xi32>
    %307 = arith.muli %305, %306 : vector<2x16xi32>
    %308 = arith.cmpi eq, %304, %307 : vector<2x16xi32>
    %309 = arith.extui %308 : vector<2x16xi1> to vector<2x16xi32>
    %310 = arith.sitofp %309 : vector<2x16xi32> to vector<2x16xf32>
    %311 = arith.truncf %310 : vector<2x16xf32> to vector<2x16xbf16>
    %312 = arith.truncf %303 : vector<16x32xf32> to vector<16x32xbf16>
    %cst_97 = arith.constant dense<0.000000e+00> : vector<2x32xf32>
    %313 = tpu.matmul %311, %312, %cst_97 {dimension_numbers = #tpu.dot_dimension_numbers<[1], [0], [0], [1], [0, 0, 1, 1], [], []>} : vector<2x16xbf16>, vector<16x32xbf16>, vector<2x32xf32> -> vector<2x32xf32>
    %314 = arith.truncf %313 : vector<2x32xf32> to vector<2x32xbf16>
    %c320 = arith.constant 320 : index
    %c0_98 = arith.constant 0 : index
    %315 = vector.load %arg2[%c320, %c0_98] : memref<384x96xbf16, #tpu.memory_space<vmem>>, vector<32x32xbf16>
    %cst_99 = arith.constant dense<0.000000e+00> : vector<2x32xf32>
    %316 = tpu.matmul %314, %315, %cst_99 {dimension_numbers = #tpu.dot_dimension_numbers<[1], [0], [0], [1], [0, 0, 1, 1], [], []>} : vector<2x32xbf16>, vector<32x32xbf16>, vector<2x32xf32> -> vector<2x32xf32>
    %c18 = arith.constant 18 : index
    %c0_100 = arith.constant 0 : index
    %317 = vector.load %arg3[%c18, %c0_100] : memref<20x96xf32, #tpu.memory_space<vmem>>, vector<1x32xf32>
    %318 = vector.broadcast %317 : vector<1x32xf32> to vector<2x32xf32>
    %319 = arith.addf %316, %318 : vector<2x32xf32>
    %320 = math.tanh %319 : vector<2x32xf32>
    %321 = arith.truncf %320 : vector<2x32xf32> to vector<2x32xbf16>
    %c352 = arith.constant 352 : index
    %c0_101 = arith.constant 0 : index
    %322 = vector.load %arg2[%c352, %c0_101] : memref<384x96xbf16, #tpu.memory_space<vmem>>, vector<32x5xbf16>
    %cst_102 = arith.constant dense<0.000000e+00> : vector<2x5xf32>
    %323 = tpu.matmul %321, %322, %cst_102 {dimension_numbers = #tpu.dot_dimension_numbers<[1], [0], [0], [1], [0, 0, 1, 1], [], []>} : vector<2x32xbf16>, vector<32x5xbf16>, vector<2x5xf32> -> vector<2x5xf32>
    %c19 = arith.constant 19 : index
    %c0_103 = arith.constant 0 : index
    %324 = vector.load %arg3[%c19, %c0_103] : memref<20x96xf32, #tpu.memory_space<vmem>>, vector<1x5xf32>
    %325 = vector.broadcast %324 : vector<1x5xf32> to vector<2x5xf32>
    %326 = arith.addf %323, %325 : vector<2x5xf32>
    %c0_104 = arith.constant 0 : index
    %c0_105 = arith.constant 0 : index
    %327 = vector.load %arg4[%c0_104, %c0_105] : memref<2x5xf32, #tpu.memory_space<vmem>>, vector<2x5xf32>
    tpu.vector_store %arg4[%c0_104, %c0_105], %326 {strides = array<i32>} : memref<2x5xf32, #tpu.memory_space<vmem>>, vector<2x5xf32>,
    return
  }
}

</mosaic_0001>

<bundles_post_ra>
// kernel: custom_model_forward.1
= control target key start
LH: loop header
LB: loop body
LE: loop exit
PB: predicated region body
PF: predicated region fallthrough
CT: control target
= control target key end

     0   :  { %vm25_vm0 = vcmask 261120   ;;  %s2382_s0 = inlined_call_operand.vmem [shape: f32[16,32], index: 0, kind: input, shape index: {}]   ;;  %s2383_s1 = inlined_call_operand.vmem [shape: f32[16,16], index: 1, kind: input, shape index: {}]   ;;  %s2384_s2 = inlined_call_operand.vmem [shape: bf16[384,96], index: 2, kind: input, shape index: {}]   ;;  %s2385_s3 = inlined_call_operand.vmem [shape: f32[20,96], index: 3, kind: input, shape index: {}]   ;;  %s2386_s4 = inlined_call_operand.hbm [shape: f32[2,5], index: 4, kind: output, shape index: {}]  }
   0x1   :  { %v21_v0 = vld [vmem:[%s2382_s0] sm:$0xff]  ;;  %v22_v1 = vld [vmem:[%s2382_s0 + $0x8] sm:$0xff] }
   0x2   :  { %v26_v2 = vsel %vm25_vm0, %v21_v0, 0.0  ;;  %v29_v3 = vsel %vm25_vm0, %v22_v1, 0.0 }
   0x3   :  { %27 = vadd.xlane.f32.xlu0 %v26_v2 }
   0x7   :  { %30 = vadd.xlane.f32.xlu0 %v29_v3 }
   0x8   :  { %9 = vsyncpa [#allocation3], 0  ;;  %v1903_v14 = vld [vmem:[%s2384_s2 + $0x8] sm:$0xff]   ;;  %v2011_v15 = vmov 0.0   ;;  %vm2012_vm1 = vmmov 0   ;;  %v1904_v16 = vld [vmem:[%s2384_s2] sm:$0xff]  }
   0x9   :  { %1745 = vmatprep.subr.bf16.mxu0 %v2011_v15  ;;  %1749 = vmatprep.mubr.msk.bf16.mxu0 %vm2012_vm1, %v2011_v15  ;;  %v1625_v25 = vld [vmem:[%s2385_s3] ss:$0 sm:$0xff]  ;;  %v1626_v29 = vld [vmem:[%s2385_s3 + $0x1] ss:$0 sm:$0xff]  ;;  %v1627_v35 = vld [vmem:[%s2385_s3 + $0x2] ss:$0 sm:$0xff] }
   0xa   :  { %1746 = vmatpush3.bf16.msra.mxu0 %v1903_v14  ;;  %1753 = vmatprep.subr.bf16.mxu1 %v2011_v15  ;;  %s2013_s28 = smov 64   ;;  %s2014_s29 = smov 112   ;;  %vm135_vm2 = vcmask 130048   ;;  %v2108_v48 = vld [vmem:[%s2383_s1] sm:$0xff]  ;;  %v2114_v53 = vld [vmem:[%s2383_s1 + $0x8] sm:$0xff]  ;;  %vm659_vm3 = vcmask 523264  }
   0xb   :  { %1747 = vmatprep.subr.bf16.mxu0 %v2011_v15  ;;  %1755 = vmatprep.mubr.msk.bf16.mxu1 %vm2012_vm1, %v2011_v15  ;;  %s2015_s30 = smov 80   ;;  %s2016_s1 = smov 96   ;;  %vm1609_vm5 = vcmask 33792  }
   0xc   :  { %s2017_s9 = smov 48  }
   0xe   :  { %1748 = vmatpush3.bf16.msra.mxu0 %v1904_v16 }
   0xf   :  { %1759 = vmatprep.subr.bf16.mxu0 %v2011_v15 }
  0x8c   :  { %v28_v4 = vpop.xlane.xlu0 %27 }
  0x8d   :  { %v33_v5 = vmul.f32 0.03125, %v28_v4 }
  0x8f   :  { %v35_v6 = vsub.f32 %v21_v0, %v33_v5 }
  0x90   :  { %v31_v7 = vpop.xlane.xlu0 %30 }
  0x91   :  { %v34_v8 = vmul.f32 0.03125, %v31_v7  ;;  %v37_v9 = vmul.f32 %v35_v6, %v35_v6 }
  0x93   :  { %v36_v10 = vsub.f32 %v22_v1, %v34_v8  ;;  %v39_v11 = vsel %vm25_vm0, %v37_v9, 0.0 }
  0x94   :  { %40 = vadd.xlane.f32.xlu1 %v39_v11 }
  0x95   :  { %v38_v12 = vmul.f32 %v36_v10, %v36_v10 }
  0x97   :  { %v42_v13 = vsel %vm25_vm0, %v38_v12, 0.0 }
  0x98   :  { %43 = vadd.xlane.f32.xlu1 %v42_v13 }
 0x11d   :  { %v41_v17 = vpop.xlane.xlu1 %40 }
 0x11e   :  { %v45_v18 = vmul.f32 0.03125, %v41_v17 }
 0x120   :  { %v47_v19 = vadd.f32 1e-05, %v45_v18 }
 0x121   :  { %v44_v20 = vpop.xlane.xlu1 %43 }
 0x122   :  { %1927 = vrsqrt.f32 %v47_v19  ;;  %v46_v21 = vmul.f32 0.03125, %v44_v20 }
 0x124   :  { %v48_v22 = vadd.f32 1e-05, %v46_v21 }
 0x126   :  { %1929 = vrsqrt.f32 %v48_v22 }
 0x12f   :  { %v1928_v23 = vpop.eup %1927 }
 0x130   :  { %v51_v24 = vmul.f32 %v1928_v23, %v35_v6 }
 0x132   :  { %v57_v28 = vmul.f32 %v1625_v25, %v51_v24 }
 0x133   :  { %v1930_v26 = vpop.eup %1929 }
 0x134   :  { %v52_v27 = vmul.f32 %v1930_v26, %v36_v10  ;;  %v2074_v31 = vadd.f32 %v1626_v29, %v57_v28 }
 0x136   :  { %v58_v30 = vmul.f32 %v1625_v25, %v52_v27 }
 0x138   :  { %v2076_v32 = vadd.f32 %v1626_v29, %v58_v30 }
 0x13a   :  { %v65_v33 = vpack.c.bf16 %v2076_v32, %v2074_v31 }
 0x13c   :  { %1750 = vmatmul.mubr.msk.bf16.vlgmr.msra.gmra.mxu0 %vm25_vm0, %v65_v33 }
 0x13d   :  { %1761 = vmatprep.mubr.msk.bf16.mxu0 %vm2012_vm1, %v2011_v15 }
 0x1fc   :  { %v124_v34 = vpop.f32.mrf.mxu0 }
 0x1fd   :  { %v125_v38 = vadd.f32 %v1627_v35, %v124_v34 }
 0x1fe   :  { %v1751_v36 = vpop.f32.mrf.mxu0 }
 0x200   :  { %v127_v37 = vpop.f32.mrf.mxu0 }
 0x201   :  { %v128_v39 = vadd.f32 %v1627_v35, %v127_v37 }
 0x202   :  { %v1752_v40 = vpop.f32.mrf.mxu0 }
 0x203   :  { %v2086_v41 = vpack.c.bf16 %v128_v39, %v125_v38 }
 0x205   :  { %262 = vrot.lane.b32.xlu1 %v2086_v41, %s2013_s28  ;;  %133 = vrot.lane.b32.xlu0 %v2086_v41, %s2014_s29 }
 0x209   :  { %260 = vrot.lane.b32.xlu1 %v2086_v41, %s2015_s30 }
 0x277   :  { %v134_v42 = vpop.permute.xlu0 %133  ;;  %v263_v44 = vpop.permute.xlu1 %262 }
 0x278   :  { %v140_v43 = vsel %vm135_vm2, %v134_v42, 0  ;;  %v268_v45 = vsel %vm135_vm2, %v263_v44, 0  ;;  %v1905_v44 = vld [vmem:[%s2384_s2 + $0x10] sm:$0xff]  }
 0x279   :  { %1754 = vmatpush3.bf16.xpose.msra.mxu1 %v140_v43 }
 0x27a   :  { %1765 = vmatprep.subr.bf16.mxu1 %v2011_v15 }
 0x27b   :  { %v261_v46 = vpop.permute.xlu1 %260 }
 0x280   :  { %1756 = vmatmul.mubr.msk.bf16.vlgmr.msra.gmra.mxu1 %vm135_vm2, %v2086_v41 }
 0x281   :  { %1766 = vmatpush3.bf16.xpose.msra.mxu1 %v268_v45  ;;  %1767 = vmatprep.mubr.msk.bf16.mxu1 %vm2012_vm1, %v2011_v15  ;;  %v1906_v45 = vld [vmem:[%s2384_s2 + $0x18] sm:$0xff]  }
 0x282   :  { %1777 = vmatprep.subr.bf16.mxu1 %v2011_v15 }
 0x288   :  { %1768 = vmatmul.mubr.msk.bf16.vlgmr.msra.gmra.mxu1 %vm135_vm2, %v261_v46 }
 0x289   :  { %1779 = vmatprep.mubr.msk.bf16.mxu1 %vm2012_vm1, %v2011_v15  ;;  %1778 = vmatpush3.bf16.msra.mxu1 %v1906_v45  ;;  %v1642_v45 = vld [vmem:[%s2385_s3 + $0x6] ss:$0 sm:$0xff] }
 0x28a   :  { %1789 = vmatprep.subr.bf16.mxu1 %v2011_v15 }
 0x340   :  { %v176_v47 = vpop.f32.mrf.mxu1 }
 0x341   :  { %v183_v49 = vmul.f32 0.25, %v176_v47 }
 0x342   :  { %v1757_v50 = vpop.f32.mrf.mxu1 }
 0x343   :  { %v185_v51 = vadd.f32 %v183_v49, %v2108_v48 }
 0x344   :  { %v179_v52 = vpop.f32.mrf.mxu1 }
 0x345   :  { %v184_v54 = vmul.f32 0.25, %v179_v52  ;;  %v187_v55 = vsel %vm135_vm2, %v185_v51, -inf }
 0x346   :  { %v1758_v56 = vpop.f32.mrf.mxu1  ;;  %188 = vmax.xlane.f32.xlu1 %v187_v55 }
 0x347   :  { %v186_v57 = vadd.f32 %v184_v54, %v2114_v53 }
 0x348   :  { %v304_v58 = vpop.f32.mrf.mxu1 }
 0x349   :  { %v311_v59 = vmul.f32 0.25, %v304_v58  ;;  %v190_v60 = vsel %vm135_vm2, %v186_v57, -inf }
 0x34a   :  { %v1769_v61 = vpop.f32.mrf.mxu1  ;;  %191 = vmax.xlane.f32.xlu0 %v190_v60 }
 0x34b   :  { %v313_v62 = vadd.f32 %v311_v59, %v2108_v48 }
 0x34c   :  { %v307_v63 = vpop.f32.mrf.mxu1 }
 0x34d   :  { %v312_v0 = vmul.f32 0.25, %v307_v63  ;;  %v315_v1 = vsel %vm135_vm2, %v313_v62, -inf  ;;  %v1639_v63 = vld [vmem:[%s2385_s3 + $0x3] ss:$0 sm:$0xff] }
 0x34e   :  { %v1770_v2 = vpop.f32.mrf.mxu1  ;;  %316 = vmax.xlane.f32.xlu0 %v315_v1 }
 0x34f   :  { %v314_v3 = vadd.f32 %v312_v0, %v2114_v53 }
 0x351   :  { %v318_v4 = vsel %vm135_vm2, %v314_v3, -inf }
 0x352   :  { %319 = vmax.xlane.f32.xlu0 %v318_v4 }
 0x3cf   :  { %v189_v5 = vpop.xlane.xlu1 %188 }
 0x3d0   :  { %v193_v6 = vsub.f32 %v185_v51, %v189_v5 }
 0x3d2   :  { %v195_v7 = vmul.f32 1.442695, %v193_v6 }
 0x3d3   :  { %v192_v8 = vpop.xlane.xlu0 %191 }
 0x3d4   :  { %1931 = vpow2.f32 %v195_v7  ;;  %v194_v9 = vsub.f32 %v186_v57, %v192_v8 }
 0x3d6   :  { %v197_v10 = vmul.f32 1.442695, %v194_v9 }
 0x3d7   :  { %v317_v11 = vpop.xlane.xlu0 %316 }
 0x3d8   :  { %1933 = vpow2.f32 %v197_v10  ;;  %v321_v12 = vsub.f32 %v313_v62, %v317_v11 }
 0x3da   :  { %v323_v13 = vmul.f32 1.442695, %v321_v12 }
 0x3db   :  { %v320_v14 = vpop.xlane.xlu0 %319 }
 0x3dc   :  { %1935 = vpow2.f32 %v323_v13  ;;  %v322_v16 = vsub.f32 %v314_v3, %v320_v14 }
 0x3de   :  { %v325_v17 = vmul.f32 1.442695, %v322_v16 }
 0x3e0   :  { %1937 = vpow2.f32 %v325_v17 }
 0x3e1   :  { %v1932_v18 = vpop.eup %1931 }
 0x3e2   :  { %v199_v19 = vsel %vm135_vm2, %v1932_v18, 0.0 }
 0x3e3   :  { %200 = vadd.xlane.f32.xlu1 %v199_v19 }
 0x3e5   :  { %v1934_v20 = vpop.eup %1933 }
 0x3e6   :  { %v202_v21 = vsel %vm135_vm2, %v1934_v20, 0.0 }
 0x3e7   :  { %203 = vadd.xlane.f32.xlu0 %v202_v21  ;;  %v1908_v21 = vld [vmem:[%s2384_s2 + $0x20] sm:$0xff]  }
 0x3e9   :  { %v1936_v22 = vpop.eup %1935 }
 0x3ea   :  { %v327_v23 = vsel %vm135_vm2, %v1936_v22, 0.0 }
 0x3eb   :  { %328 = vadd.xlane.f32.xlu1 %v327_v23 }
 0x3ed   :  { %v1938_v24 = vpop.eup %1937 }
 0x3ee   :  { %v330_v25 = vsel %vm135_vm2, %v1938_v24, 0.0 }
 0x3ef   :  { %331 = vadd.xlane.f32.xlu0 %v330_v25 }
 0x3fc   :  { %210 = vrot.lane.b32.xlu1 %v2086_v41, %s2016_s1 }
 0x405   :  { %338 = vrot.lane.b32.xlu0 %v2086_v41, %s2017_s9 }
 0x46c   :  { %v201_v26 = vpop.xlane.xlu1 %200 }
 0x46d   :  { %1939 = vrcp.f32 %v201_v26 }
 0x470   :  { %v204_v27 = vpop.xlane.xlu0 %203 }
 0x471   :  { %1941 = vrcp.f32 %v204_v27 }
 0x474   :  { %v329_v28 = vpop.xlane.xlu1 %328 }
 0x475   :  { %1943 = vrcp.f32 %v329_v28 }
 0x478   :  { %v332_v29 = vpop.xlane.xlu0 %331  ;;  %v211_v30 = vpop.permute.xlu1 %210 }
 0x479   :  { %1945 = vrcp.f32 %v332_v29  ;;  %1760 = vmatpush3.bf16.msra.mxu0 %v211_v30  ;;  %v1640_v30 = vld [vmem:[%s2385_s3 + $0x4] ss:$0 sm:$0xff] }
 0x47a   :  { %1771 = vmatprep.subr.bf16.mxu0 %v2011_v15  ;;  %v1940_v33 = vpop.eup %1939 }
 0x47b   :  { %v207_v35 = vmul.f32 %v1940_v33, %v1932_v18 }
 0x47c   :  { %v339_v38 = vpop.permute.xlu0 %338 }
 0x47e   :  { %v1942_v34 = vpop.eup %1941 }
 0x47f   :  { %v208_v36 = vmul.f32 %v1942_v34, %v1934_v20 }
 0x481   :  { %v209_v37 = vpack.c.bf16 %v208_v36, %v207_v35  ;;  %v1641_v36 = vld [vmem:[%s2385_s3 + $0x5] ss:$0 sm:$0xff] }
 0x482   :  { %v1944_v39 = vpop.eup %1943 }
 0x483   :  { %1762 = vmatmul.mubr.msk.bf16.vlgmr.msra.gmra.mxu0 %vm135_vm2, %v209_v37  ;;  %v335_v41 = vmul.f32 %v1944_v39, %v1936_v22 }
 0x484   :  { %1772 = vmatpush3.bf16.msra.mxu0 %v339_v38  ;;  %1773 = vmatprep.mubr.msk.bf16.mxu0 %vm2012_vm1, %v2011_v15 }
 0x485   :  { %1783 = vmatprep.subr.bf16.mxu0 %v2011_v15 }
 0x486   :  { %v1946_v40 = vpop.eup %1945 }
 0x487   :  { %v336_v42 = vmul.f32 %v1946_v40, %v1938_v24 }
 0x489   :  { %v337_v43 = vpack.c.bf16 %v336_v42, %v335_v41  ;;  %v1909_v41 = vld [vmem:[%s2384_s2 + $0x48] sm:$0xff]   ;;  %v1910_v42 = vld [vmem:[%s2384_s2 + $0x40] sm:$0xff]  }
 0x48b   :  { %1774 = vmatmul.mubr.msk.bf16.vlgmr.msra.gmra.mxu0 %vm135_vm2, %v337_v43  ;;  %v1911_v43 = vld [vmem:[%s2384_s2 + $0x38] sm:$0xff]  }
 0x48c   :  { %1785 = vmatprep.mubr.msk.bf16.mxu0 %vm2012_vm1, %v2011_v15  ;;  %1784 = vmatpush3.bf16.msra.mxu0 %v1905_v44  ;;  %v1912_v44 = vld [vmem:[%s2384_s2 + $0x30] sm:$0xff]  }
 0x48d   :  { %1797 = vmatprep.subr.bf16.mxu0 %v2011_v15 }
 0x543   :  { %v250_v46 = vpop.f32.mrf.mxu0 }
 0x545   :  { %v1763_v47 = vpop.f32.mrf.mxu0 }
 0x547   :  { %v253_v49 = vpop.f32.mrf.mxu0 }
 0x548   :  { %v259_v50 = vpack.c.bf16 %v253_v49, %v250_v46 }
 0x549   :  { %v1764_v51 = vpop.f32.mrf.mxu0 }
 0x54a   :  { %1786 = vmatmul.mubr.msk.bf16.vlgmr.msra.gmra.mxu0 %vm135_vm2, %v259_v50 }
 0x54b   :  { %v378_v52 = vpop.f32.mrf.mxu0  ;;  %1805 = vmatprep.mubr.msk.bf16.mxu0 %vm2012_vm1, %v2011_v15  ;;  %1798 = vmatpush3.bf16.msra.mxu0 %v1909_v41  ;;  %v1652_v41 = vld [vmem:[%s2385_s3 + $0x8] ss:$0 sm:$0xff] }
 0x54c   :  { %1799 = vmatprep.subr.bf16.mxu0 %v2011_v15 }
 0x54d   :  { %v1775_v54 = vpop.f32.mrf.mxu0 }
 0x54f   :  { %v381_v55 = vpop.f32.mrf.mxu0  ;;  %1800 = vmatpush3.bf16.msra.mxu0 %v1910_v42 }
 0x550   :  { %v387_v56 = vpack.c.bf16 %v381_v55, %v378_v52  ;;  %1801 = vmatprep.subr.bf16.mxu0 %v2011_v15 }
 0x551   :  { %v1776_v57 = vpop.f32.mrf.mxu0 }
 0x552   :  { %1780 = vmatmul.mubr.msk.bf16.vlgmr.msra.gmra.mxu1 %vm135_vm2, %v387_v56 }
 0x553   :  { %1793 = vmatprep.mubr.msk.bf16.mxu1 %vm2012_vm1, %v2011_v15  ;;  %1802 = vmatpush3.bf16.msra.mxu0 %v1911_v43 }
 0x554   :  { %1803 = vmatprep.subr.bf16.mxu0 %v2011_v15 }
 0x557   :  { %1804 = vmatpush3.bf16.msra.mxu0 %v1912_v44 }
 0x558   :  { %1823 = vmatprep.subr.bf16.mxu0 %v2011_v15 }
 0x60a   :  { %v481_v58 = vpop.f32.mrf.mxu0 }
 0x60c   :  { %v1787_v59 = vpop.f32.mrf.mxu0 }
 0x60e   :  { %v484_v60 = vpop.f32.mrf.mxu0 }
 0x610   :  { %v1788_v61 = vpop.f32.mrf.mxu0 }
 0x612   :  { %v431_v62 = vpop.f32.mrf.mxu1 }
 0x613   :  { %v482_v0 = vadd.f32 %v481_v58, %v431_v62 }
 0x614   :  { %v1781_v1 = vpop.f32.mrf.mxu1 }
 0x615   :  { %v493_v2 = vadd.f32 %v1639_v63, %v482_v0 }
 0x616   :  { %v434_v3 = vpop.f32.mrf.mxu1 }
 0x617   :  { %v485_v4 = vadd.f32 %v484_v60, %v434_v3  ;;  %v495_v5 = vadd.f32 %v493_v2, %v2074_v31 }
 0x618   :  { %v1782_v6 = vpop.f32.mrf.mxu1 }
 0x619   :  { %v494_v7 = vadd.f32 %v1639_v63, %v485_v4  ;;  %v499_v8 = vsel %vm25_vm0, %v495_v5, 0.0 }
 0x61a   :  { %500 = vadd.xlane.f32.xlu1 %v499_v8 }
 0x61b   :  { %v496_v9 = vadd.f32 %v494_v7, %v2076_v32  ;;  %v1907_v32 = vld [vmem:[%s2384_s2 + $0x28] sm:$0xff]  }
 0x61c   :  { %1790 = vmatpush3.bf16.msra.mxu1 %v1907_v32 }
 0x61d   :  { %v502_v10 = vsel %vm25_vm0, %v496_v9, 0.0  ;;  %1791 = vmatprep.subr.bf16.mxu1 %v2011_v15 }
 0x61e   :  { %503 = vadd.xlane.f32.xlu0 %v502_v10 }
 0x620   :  { %1792 = vmatpush3.bf16.msra.mxu1 %v1908_v21 }
 0x621   :  { %1809 = vmatprep.subr.bf16.mxu1 %v2011_v15 }
 0x6a3   :  { %v501_v11 = vpop.xlane.xlu1 %500 }
 0x6a4   :  { %v505_v12 = vmul.f32 0.03125, %v501_v11 }
 0x6a6   :  { %v507_v13 = vsub.f32 %v495_v5, %v505_v12 }
 0x6a7   :  { %v504_v14 = vpop.xlane.xlu0 %503 }
 0x6a8   :  { %v506_v16 = vmul.f32 0.03125, %v504_v14  ;;  %v509_v17 = vmul.f32 %v507_v13, %v507_v13 }
 0x6aa   :  { %v508_v18 = vsub.f32 %v496_v9, %v506_v16  ;;  %v511_v19 = vsel %vm25_vm0, %v509_v17, 0.0  ;;  %v1646_v9 = vld [vmem:[%s2385_s3 + $0x7] ss:$0 sm:$0xff] }
 0x6ab   :  { %512 = vadd.xlane.f32.xlu1 %v511_v19 }
 0x6ac   :  { %v510_v31 = vmul.f32 %v508_v18, %v508_v18 }
 0x6ae   :  { %v514_v20 = vsel %vm25_vm0, %v510_v31, 0.0 }
 0x6af   :  { %515 = vadd.xlane.f32.xlu0 %v514_v20 }
 0x734   :  { %v513_v22 = vpop.xlane.xlu1 %512 }
 0x735   :  { %v517_v23 = vmul.f32 0.03125, %v513_v22 }
 0x737   :  { %v519_v24 = vadd.f32 1e-05, %v517_v23 }
 0x738   :  { %v516_v25 = vpop.xlane.xlu0 %515 }
 0x739   :  { %1947 = vrsqrt.f32 %v519_v24  ;;  %v518_v26 = vmul.f32 0.03125, %v516_v25 }
 0x73b   :  { %v520_v27 = vadd.f32 1e-05, %v518_v26 }
 0x73d   :  { %1949 = vrsqrt.f32 %v520_v27 }
 0x746   :  { %v1948_v28 = vpop.eup %1947 }
 0x747   :  { %v523_v29 = vmul.f32 %v1948_v28, %v507_v13 }
 0x749   :  { %v529_v35 = vmul.f32 %v1640_v30, %v523_v29  ;;  %v1913_v29 = vld [vmem:[%s2384_s2 + $0x58] sm:$0xff]  }
 0x74a   :  { %v1950_v33 = vpop.eup %1949 }
 0x74b   :  { %v524_v34 = vmul.f32 %v1950_v33, %v508_v18  ;;  %v535_v38 = vadd.f32 %v1641_v36, %v529_v35 }
 0x74d   :  { %v530_v37 = vmul.f32 %v1640_v30, %v524_v34  ;;  %v1914_v30 = vld [vmem:[%s2384_s2 + $0x50] sm:$0xff]  }
 0x74f   :  { %v536_v39 = vadd.f32 %v1641_v36, %v530_v37 }
 0x751   :  { %v537_v40 = vpack.c.bf16 %v536_v39, %v535_v38 }
 0x753   :  { %1794 = vmatmul.mubr.msk.bf16.vlgmr.msra.gmra.mxu1 %vm25_vm0, %v537_v40 }
 0x754   :  { %1813 = vmatprep.mubr.msk.bf16.mxu1 %vm2012_vm1, %v2011_v15  ;;  %1810 = vmatpush3.bf16.msra.mxu1 %v1913_v29 }
 0x755   :  { %1811 = vmatprep.subr.bf16.mxu1 %v2011_v15 }
 0x758   :  { %1812 = vmatpush3.bf16.msra.mxu1 %v1914_v30 }
 0x759   :  { %1817 = vmatprep.subr.bf16.mxu1 %v2011_v15 }
 0x813   :  { %v596_v46 = vpop.f32.mrf.mxu1 }
 0x814   :  { %v597_v47 = vadd.f32 %v1642_v45, %v596_v46 }
 0x815   :  { %v1795_v49 = vpop.f32.mrf.mxu1 }
 0x816   :  { %v603_v50 = vmul.f32 %v597_v47, %v597_v47 }
 0x817   :  { %v599_v51 = vpop.f32.mrf.mxu1 }
 0x818   :  { %v605_v52 = vmul.f32 %v603_v50, %v597_v47  ;;  %v600_v54 = vadd.f32 %v1642_v45, %v599_v51  ;;  %v1653_v45 = vld [vmem:[%s2385_s3 + $0x9] ss:$0 sm:$0xff] }
 0x819   :  { %v1796_v55 = vpop.f32.mrf.mxu1 }
 0x81a   :  { %v607_v56 = vmul.f32 0.044715, %v605_v52  ;;  %v604_v57 = vmul.f32 %v600_v54, %v600_v54  ;;  %v1654_v52 = vld [vmem:[%s2385_s3 + $0xa] ss:$0 sm:$0xff] }
 0x81c   :  { %v609_v58 = vadd.f32 %v607_v56, %v597_v47  ;;  %v606_v59 = vmul.f32 %v604_v57, %v600_v54 }
 0x81e   :  { %v611_v60 = vmul.f32 0.7978846, %v609_v58  ;;  %v608_v61 = vmul.f32 0.044715, %v606_v59 }
 0x820   :  { %1951 = vtanh.f32 %v611_v60  ;;  %v610_v62 = vadd.f32 %v608_v61, %v600_v54 }
 0x822   :  { %v612_v63 = vmul.f32 0.7978846, %v610_v62 }
 0x824   :  { %1953 = vtanh.f32 %v612_v63 }
 0x82d   :  { %v1952_v0 = vpop.eup %1951 }
 0x82e   :  { %v615_v1 = vadd.f32 1.0, %v1952_v0 }
 0x830   :  { %v617_v3 = vmul.f32 0.5, %v615_v1 }
 0x831   :  { %v1954_v2 = vpop.eup %1953 }
 0x832   :  { %v616_v4 = vadd.f32 1.0, %v1954_v2  ;;  %v619_v6 = vmul.f32 %v617_v3, %v597_v47 }
 0x834   :  { %v618_v5 = vmul.f32 0.5, %v616_v4 }
 0x836   :  { %v620_v7 = vmul.f32 %v618_v5, %v600_v54 }
 0x838   :  { %v621_v8 = vpack.c.bf16 %v620_v7, %v619_v6 }
 0x83a   :  { %1806 = vmatmul.mubr.msk.bf16.vlgmr.msra.gmra.mxu0 %vm659_vm3, %v621_v8 }
 0x83b   :  { %1825 = vmatprep.mubr.msk.bf16.mxu0 %vm2012_vm1, %v2011_v15 }
 0x8fa   :  { %v697_v10 = vpop.f32.mrf.mxu0 }
 0x8fb   :  { %v698_v11 = vadd.f32 %v1646_v9, %v697_v10 }
 0x8fc   :  { %v1807_v12 = vpop.f32.mrf.mxu0 }
 0x8fd   :  { %v704_v13 = vadd.f32 %v698_v11, %v535_v38 }
 0x8fe   :  { %v700_v14 = vpop.f32.mrf.mxu0 }
 0x8ff   :  { %v701_v16 = vadd.f32 %v1646_v9, %v700_v14  ;;  %v708_v17 = vsel %vm25_vm0, %v704_v13, 0.0 }
 0x900   :  { %709 = vadd.xlane.f32.xlu1 %v708_v17  ;;  %v1808_v18 = vpop.f32.mrf.mxu0 }
 0x901   :  { %v705_v19 = vadd.f32 %v701_v16, %v536_v39 }
 0x903   :  { %v711_v31 = vsel %vm25_vm0, %v705_v19, 0.0 }
 0x904   :  { %712 = vadd.xlane.f32.xlu0 %v711_v31 }
 0x989   :  { %v710_v20 = vpop.xlane.xlu1 %709 }
 0x98a   :  { %v714_v32 = vmul.f32 0.03125, %v710_v20 }
 0x98c   :  { %v716_v21 = vsub.f32 %v704_v13, %v714_v32 }
 0x98d   :  { %v713_v22 = vpop.xlane.xlu0 %712 }
 0x98e   :  { %v715_v23 = vmul.f32 0.03125, %v713_v22  ;;  %v718_v24 = vmul.f32 %v716_v21, %v716_v21 }
 0x990   :  { %v717_v25 = vsub.f32 %v705_v19, %v715_v23  ;;  %v720_v26 = vsel %vm25_vm0, %v718_v24, 0.0 }
 0x991   :  { %721 = vadd.xlane.f32.xlu1 %v720_v26 }
 0x992   :  { %v719_v27 = vmul.f32 %v717_v25, %v717_v25 }
 0x994   :  { %v723_v28 = vsel %vm25_vm0, %v719_v27, 0.0 }
 0x995   :  { %724 = vadd.xlane.f32.xlu0 %v723_v28 }
 0xa1a   :  { %v722_v33 = vpop.xlane.xlu1 %721 }
 0xa1b   :  { %v726_v34 = vmul.f32 0.03125, %v722_v33 }
 0xa1d   :  { %v728_v35 = vadd.f32 1e-05, %v726_v34 }
 0xa1e   :  { %v725_v36 = vpop.xlane.xlu0 %724 }
 0xa1f   :  { %1955 = vrsqrt.f32 %v728_v35  ;;  %v727_v37 = vmul.f32 0.03125, %v725_v36 }
 0xa21   :  { %v729_v38 = vadd.f32 1e-05, %v727_v37 }
 0xa23   :  { %1957 = vrsqrt.f32 %v729_v38 }
 0xa2c   :  { %v1956_v39 = vpop.eup %1955 }
 0xa2d   :  { %v732_v40 = vmul.f32 %v1956_v39, %v716_v21 }
 0xa2f   :  { %v738_v44 = vmul.f32 %v1652_v41, %v732_v40 }
 0xa30   :  { %v1958_v42 = vpop.eup %1957 }
 0xa31   :  { %v733_v43 = vmul.f32 %v1958_v42, %v717_v25  ;;  %v2222_v47 = vadd.f32 %v1653_v45, %v738_v44 }
 0xa33   :  { %v739_v46 = vmul.f32 %v1652_v41, %v733_v43 }
 0xa35   :  { %v2224_v49 = vadd.f32 %v1653_v45, %v739_v46 }
 0xa37   :  { %v746_v50 = vpack.c.bf16 %v2224_v49, %v2222_v47 }
 0xa39   :  { %1814 = vmatmul.mubr.msk.bf16.vlgmr.msra.gmra.mxu1 %vm25_vm0, %v746_v50 }
 0xa3a   :  { %1819 = vmatprep.mubr.msk.bf16.mxu1 %vm2012_vm1, %v2011_v15 }
 0xaf9   :  { %v805_v51 = vpop.f32.mrf.mxu1 }
 0xafa   :  { %v806_v56 = vadd.f32 %v1654_v52, %v805_v51 }
 0xafb   :  { %v1815_v54 = vpop.f32.mrf.mxu1 }
 0xafd   :  { %v808_v55 = vpop.f32.mrf.mxu1 }
 0xafe   :  { %v809_v57 = vadd.f32 %v1654_v52, %v808_v55 }
 0xaff   :  { %v1816_v58 = vpop.f32.mrf.mxu1 }
 0xb00   :  { %v2234_v59 = vpack.c.bf16 %v809_v57, %v806_v56 }
 0xb02   :  { %942 = vrot.lane.b32.xlu0 %v2234_v59, %s2013_s28  ;;  %814 = vrot.lane.b32.xlu1 %v2234_v59, %s2014_s29 }
 0xb06   :  { %940 = vrot.lane.b32.xlu1 %v2234_v59, %s2015_s30 }
 0xb74   :  { %v815_v60 = vpop.permute.xlu1 %814  ;;  %v943_v62 = vpop.permute.xlu0 %942 }
 0xb75   :  { %v820_v61 = vsel %vm135_vm2, %v815_v60, 0  ;;  %v948_v63 = vsel %vm135_vm2, %v943_v62, 0  ;;  %v1915_v60 = vld [vmem:[%s2384_s2 + $0x60] sm:$0xff]  }
 0xb76   :  { %1818 = vmatpush3.bf16.xpose.msra.mxu1 %v820_v61  ;;  %v1916_v61 = vld [vmem:[%s2384_s2 + $0x68] sm:$0xff]  }
 0xb77   :  { %1829 = vmatprep.subr.bf16.mxu1 %v2011_v15 }
 0xb78   :  { %v941_v0 = vpop.permute.xlu1 %940 }
 0xb7d   :  { %1820 = vmatmul.mubr.msk.bf16.vlgmr.msra.gmra.mxu1 %vm135_vm2, %v2234_v59 }
 0xb7e   :  { %1830 = vmatpush3.bf16.xpose.msra.mxu1 %v948_v63  ;;  %1831 = vmatprep.mubr.msk.bf16.mxu1 %vm2012_vm1, %v2011_v15 }
 0xb7f   :  { %1841 = vmatprep.subr.bf16.mxu1 %v2011_v15 }
 0xb85   :  { %1832 = vmatmul.mubr.msk.bf16.vlgmr.msra.gmra.mxu1 %vm135_vm2, %v941_v0 }
 0xb86   :  { %1843 = vmatprep.mubr.msk.bf16.mxu1 %vm2012_vm1, %v2011_v15  ;;  %1842 = vmatpush3.bf16.msra.mxu1 %v1916_v61 }
 0xb87   :  { %1853 = vmatprep.subr.bf16.mxu1 %v2011_v15 }
 0xc3d   :  { %v856_v1 = vpop.f32.mrf.mxu1 }
 0xc3e   :  { %v863_v2 = vmul.f32 0.25, %v856_v1 }
 0xc3f   :  { %v1821_v3 = vpop.f32.mrf.mxu1 }
 0xc40   :  { %v865_v4 = vadd.f32 %v863_v2, %v2108_v48 }
 0xc41   :  { %v859_v5 = vpop.f32.mrf.mxu1 }
 0xc42   :  { %v864_v6 = vmul.f32 0.25, %v859_v5  ;;  %v867_v7 = vsel %vm135_vm2, %v865_v4, -inf }
 0xc43   :  { %868 = vmax.xlane.f32.xlu1 %v867_v7  ;;  %v1822_v8 = vpop.f32.mrf.mxu1 }
 0xc44   :  { %v866_v9 = vadd.f32 %v864_v6, %v2114_v53 }
 0xc45   :  { %v984_v10 = vpop.f32.mrf.mxu1 }
 0xc46   :  { %v991_v11 = vmul.f32 0.25, %v984_v10  ;;  %v870_v12 = vsel %vm135_vm2, %v866_v9, -inf }
 0xc47   :  { %871 = vmax.xlane.f32.xlu0 %v870_v12  ;;  %v1833_v13 = vpop.f32.mrf.mxu1 }
 0xc48   :  { %v993_v14 = vadd.f32 %v991_v11, %v2108_v48  ;;  %v1666_v13 = vld [vmem:[%s2385_s3 + $0xb] ss:$0 sm:$0xff] }
 0xc49   :  { %v987_v16 = vpop.f32.mrf.mxu1 }
 0xc4a   :  { %v992_v17 = vmul.f32 0.25, %v987_v16  ;;  %v995_v18 = vsel %vm135_vm2, %v993_v14, -inf }
 0xc4b   :  { %996 = vmax.xlane.f32.xlu0 %v995_v18  ;;  %v1834_v19 = vpop.f32.mrf.mxu1 }
 0xc4c   :  { %v994_v31 = vadd.f32 %v992_v17, %v2114_v53 }
 0xc4e   :  { %v998_v20 = vsel %vm135_vm2, %v994_v31, -inf }
 0xc4f   :  { %999 = vmax.xlane.f32.xlu1 %v998_v20 }
 0xccc   :  { %v869_v32 = vpop.xlane.xlu1 %868 }
 0xccd   :  { %v873_v21 = vsub.f32 %v865_v4, %v869_v32 }
 0xccf   :  { %v875_v22 = vmul.f32 1.442695, %v873_v21 }
 0xcd0   :  { %v872_v23 = vpop.xlane.xlu0 %871 }
 0xcd1   :  { %1959 = vpow2.f32 %v875_v22  ;;  %v874_v24 = vsub.f32 %v866_v9, %v872_v23 }
 0xcd3   :  { %v877_v25 = vmul.f32 1.442695, %v874_v24 }
 0xcd4   :  { %v997_v26 = vpop.xlane.xlu0 %996 }
 0xcd5   :  { %1961 = vpow2.f32 %v877_v25  ;;  %v1001_v48 = vsub.f32 %v993_v14, %v997_v26 }
 0xcd7   :  { %v1003_v27 = vmul.f32 1.442695, %v1001_v48 }
 0xcd8   :  { %v1000_v28 = vpop.xlane.xlu1 %999 }
 0xcd9   :  { %1963 = vpow2.f32 %v1003_v27  ;;  %v1002_v29 = vsub.f32 %v994_v31, %v1000_v28 }
 0xcdb   :  { %v1005_v30 = vmul.f32 1.442695, %v1002_v29 }
 0xcdd   :  { %1965 = vpow2.f32 %v1005_v30 }
 0xcde   :  { %v1960_v53 = vpop.eup %1959 }
 0xcdf   :  { %v879_v33 = vsel %vm135_vm2, %v1960_v53, 0.0 }
 0xce0   :  { %880 = vadd.xlane.f32.xlu0 %v879_v33  ;;  %v1918_v33 = vld [vmem:[%s2384_s2 + $0x70] sm:$0xff]  }
 0xce2   :  { %v1962_v34 = vpop.eup %1961 }
 0xce3   :  { %v882_v35 = vsel %vm135_vm2, %v1962_v34, 0.0 }
 0xce4   :  { %883 = vadd.xlane.f32.xlu1 %v882_v35 }
 0xce6   :  { %v1964_v36 = vpop.eup %1963 }
 0xce7   :  { %v1007_v37 = vsel %vm135_vm2, %v1964_v36, 0.0 }
 0xce8   :  { %1008 = vadd.xlane.f32.xlu0 %v1007_v37 }
 0xcea   :  { %v1966_v38 = vpop.eup %1965 }
 0xceb   :  { %v1010_v39 = vsel %vm135_vm2, %v1966_v38, 0.0 }
 0xcec   :  { %1011 = vadd.xlane.f32.xlu1 %v1010_v39 }
 0xcfd   :  { %1018 = vrot.lane.b32.xlu1 %v2234_v59, %s2017_s9 }
 0xcfe   :  { %890 = vrot.lane.b32.xlu0 %v2234_v59, %s2016_s1 }
 0xd69   :  { %v881_v40 = vpop.xlane.xlu0 %880 }
 0xd6a   :  { %1967 = vrcp.f32 %v881_v40 }
 0xd6d   :  { %v884_v41 = vpop.xlane.xlu1 %883 }
 0xd6e   :  { %1969 = vrcp.f32 %v884_v41 }
 0xd71   :  { %v1009_v42 = vpop.xlane.xlu0 %1008 }
 0xd72   :  { %1971 = vrcp.f32 %v1009_v42  ;;  %v1667_v42 = vld [vmem:[%s2385_s3 + $0xc] ss:$0 sm:$0xff] }
 0xd75   :  { %v891_v43 = vpop.permute.xlu0 %890  ;;  %v1012_v44 = vpop.xlane.xlu1 %1011 }
 0xd76   :  { %1973 = vrcp.f32 %v1012_v44  ;;  %1824 = vmatpush3.bf16.msra.mxu0 %v891_v43 }
 0xd77   :  { %1835 = vmatprep.subr.bf16.mxu0 %v2011_v15  ;;  %v1968_v45 = vpop.eup %1967 }
 0xd78   :  { %v887_v50 = vmul.f32 %v1968_v45, %v1960_v53 }
 0xd79   :  { %v1019_v54 = vpop.permute.xlu1 %1018 }
 0xd7b   :  { %v1970_v46 = vpop.eup %1969 }
 0xd7c   :  { %v888_v51 = vmul.f32 %v1970_v46, %v1962_v34  ;;  %v1668_v46 = vld [vmem:[%s2385_s3 + $0xd] ss:$0 sm:$0xff] }
 0xd7e   :  { %v889_v52 = vpack.c.bf16 %v888_v51, %v887_v50 }
 0xd7f   :  { %v1972_v55 = vpop.eup %1971 }
 0xd80   :  { %1826 = vmatmul.mubr.msk.bf16.vlgmr.msra.gmra.mxu0 %vm135_vm2, %v889_v52  ;;  %v1015_v57 = vmul.f32 %v1972_v55, %v1964_v36  ;;  %v1919_v55 = vld [vmem:[%s2384_s2 + $0x98] sm:$0xff]  }
 0xd81   :  { %1836 = vmatpush3.bf16.msra.mxu0 %v1019_v54  ;;  %1837 = vmatprep.mubr.msk.bf16.mxu0 %vm2012_vm1, %v2011_v15 }
 0xd82   :  { %1847 = vmatprep.subr.bf16.mxu0 %v2011_v15 }
 0xd83   :  { %v1974_v56 = vpop.eup %1973 }
 0xd84   :  { %v1016_v58 = vmul.f32 %v1974_v56, %v1966_v38  ;;  %v1920_v56 = vld [vmem:[%s2384_s2 + $0x90] sm:$0xff]  }
 0xd86   :  { %v1017_v59 = vpack.c.bf16 %v1016_v58, %v1015_v57  ;;  %v1921_v57 = vld [vmem:[%s2384_s2 + $0x88] sm:$0xff]   ;;  %v1922_v58 = vld [vmem:[%s2384_s2 + $0x80] sm:$0xff]  }
 0xd88   :  { %1838 = vmatmul.mubr.msk.bf16.vlgmr.msra.gmra.mxu0 %vm135_vm2, %v1017_v59  ;;  %v1669_v59 = vld [vmem:[%s2385_s3 + $0xe] ss:$0 sm:$0xff] }
 0xd89   :  { %1849 = vmatprep.mubr.msk.bf16.mxu0 %vm2012_vm1, %v2011_v15  ;;  %1848 = vmatpush3.bf16.msra.mxu0 %v1915_v60 }
 0xd8a   :  { %1861 = vmatprep.subr.bf16.mxu0 %v2011_v15 }
 0xe40   :  { %v930_v62 = vpop.f32.mrf.mxu0 }
 0xe42   :  { %v1827_v63 = vpop.f32.mrf.mxu0 }
 0xe44   :  { %v933_v0 = vpop.f32.mrf.mxu0 }
 0xe45   :  { %v939_v1 = vpack.c.bf16 %v933_v0, %v930_v62 }
 0xe46   :  { %v1828_v2 = vpop.f32.mrf.mxu0 }
 0xe47   :  { %1850 = vmatmul.mubr.msk.bf16.vlgmr.msra.gmra.mxu0 %vm135_vm2, %v939_v1 }
 0xe48   :  { %v1058_v3 = vpop.f32.mrf.mxu0  ;;  %1869 = vmatprep.mubr.msk.bf16.mxu0 %vm2012_vm1, %v2011_v15  ;;  %1862 = vmatpush3.bf16.msra.mxu0 %v1919_v55 }
 0xe49   :  { %1863 = vmatprep.subr.bf16.mxu0 %v2011_v15 }
 0xe4a   :  { %v1839_v4 = vpop.f32.mrf.mxu0 }
 0xe4c   :  { %v1061_v5 = vpop.f32.mrf.mxu0  ;;  %1864 = vmatpush3.bf16.msra.mxu0 %v1920_v56 }
 0xe4d   :  { %v1067_v6 = vpack.c.bf16 %v1061_v5, %v1058_v3  ;;  %1865 = vmatprep.subr.bf16.mxu0 %v2011_v15 }
 0xe4e   :  { %v1840_v7 = vpop.f32.mrf.mxu0 }
 0xe4f   :  { %1844 = vmatmul.mubr.msk.bf16.vlgmr.msra.gmra.mxu1 %vm135_vm2, %v1067_v6 }
 0xe50   :  { %1857 = vmatprep.mubr.msk.bf16.mxu1 %vm2012_vm1, %v2011_v15  ;;  %1866 = vmatpush3.bf16.msra.mxu0 %v1921_v57 }
 0xe51   :  { %1867 = vmatprep.subr.bf16.mxu0 %v2011_v15 }
 0xe54   :  { %1868 = vmatpush3.bf16.msra.mxu0 %v1922_v58 }
 0xe55   :  { %1887 = vmatprep.subr.bf16.mxu0 %v2011_v15 }
 0xf07   :  { %v1161_v8 = vpop.f32.mrf.mxu0 }
 0xf09   :  { %v1851_v9 = vpop.f32.mrf.mxu0 }
 0xf0b   :  { %v1164_v10 = vpop.f32.mrf.mxu0 }
 0xf0d   :  { %v1852_v11 = vpop.f32.mrf.mxu0 }
 0xf0f   :  { %v1111_v12 = vpop.f32.mrf.mxu1 }
 0xf10   :  { %v1162_v14 = vadd.f32 %v1161_v8, %v1111_v12 }
 0xf11   :  { %v1845_v16 = vpop.f32.mrf.mxu1 }
 0xf12   :  { %v1173_v17 = vadd.f32 %v1666_v13, %v1162_v14 }
 0xf13   :  { %v1114_v18 = vpop.f32.mrf.mxu1 }
 0xf14   :  { %v1165_v19 = vadd.f32 %v1164_v10, %v1114_v18  ;;  %v1175_v31 = vadd.f32 %v1173_v17, %v2222_v47 }
 0xf15   :  { %v1846_v20 = vpop.f32.mrf.mxu1 }
 0xf16   :  { %v1174_v32 = vadd.f32 %v1666_v13, %v1165_v19  ;;  %v1179_v21 = vsel %vm25_vm0, %v1175_v31, 0.0 }
 0xf17   :  { %1180 = vadd.xlane.f32.xlu1 %v1179_v21 }
 0xf18   :  { %v1176_v22 = vadd.f32 %v1174_v32, %v2224_v49  ;;  %v1917_v49 = vld [vmem:[%s2384_s2 + $0x78] sm:$0xff]   ;;  %v1673_v32 = vld [vmem:[%s2385_s3 + $0xf] ss:$0 sm:$0xff] }
 0xf19   :  { %1854 = vmatpush3.bf16.msra.mxu1 %v1917_v49 }
 0xf1a   :  { %v1182_v23 = vsel %vm25_vm0, %v1176_v22, 0.0  ;;  %1855 = vmatprep.subr.bf16.mxu1 %v2011_v15 }
 0xf1b   :  { %1183 = vadd.xlane.f32.xlu0 %v1182_v23 }
 0xf1d   :  { %1856 = vmatpush3.bf16.msra.mxu1 %v1918_v33 }
 0xf1e   :  { %1873 = vmatprep.subr.bf16.mxu1 %v2011_v15 }
 0xfa0   :  { %v1181_v24 = vpop.xlane.xlu1 %1180 }
 0xfa1   :  { %v1185_v25 = vmul.f32 0.03125, %v1181_v24 }
 0xfa3   :  { %v1187_v26 = vsub.f32 %v1175_v31, %v1185_v25 }
 0xfa4   :  { %v1184_v48 = vpop.xlane.xlu0 %1183 }
 0xfa5   :  { %v1186_v27 = vmul.f32 0.03125, %v1184_v48  ;;  %v1189_v28 = vmul.f32 %v1187_v26, %v1187_v26 }
 0xfa7   :  { %v1188_v29 = vsub.f32 %v1176_v22, %v1186_v27  ;;  %v1191_v30 = vsel %vm25_vm0, %v1189_v28, 0.0 }
 0xfa8   :  { %1192 = vadd.xlane.f32.xlu0 %v1191_v30 }
 0xfa9   :  { %v1190_v47 = vmul.f32 %v1188_v29, %v1188_v29 }
 0xfab   :  { %v1194_v53 = vsel %vm25_vm0, %v1190_v47, 0.0 }
 0xfac   :  { %1195 = vadd.xlane.f32.xlu1 %v1194_v53 }
0x1031   :  { %v1193_v34 = vpop.xlane.xlu0 %1192 }
0x1032   :  { %v1197_v35 = vmul.f32 0.03125, %v1193_v34 }
0x1034   :  { %v1199_v36 = vadd.f32 1e-05, %v1197_v35 }
0x1035   :  { %v1196_v37 = vpop.xlane.xlu1 %1195 }
0x1036   :  { %1975 = vrsqrt.f32 %v1199_v36  ;;  %v1198_v38 = vmul.f32 0.03125, %v1196_v37 }
0x1038   :  { %v1200_v39 = vadd.f32 1e-05, %v1198_v38 }
0x103a   :  { %1977 = vrsqrt.f32 %v1200_v39 }
0x1043   :  { %v1976_v40 = vpop.eup %1975 }
0x1044   :  { %v1203_v41 = vmul.f32 %v1976_v40, %v1187_v26 }
0x1046   :  { %v1209_v45 = vmul.f32 %v1667_v42, %v1203_v41 }
0x1047   :  { %v1978_v43 = vpop.eup %1977 }
0x1048   :  { %v1204_v44 = vmul.f32 %v1978_v43, %v1188_v29  ;;  %v1215_v51 = vadd.f32 %v1668_v46, %v1209_v45  ;;  %v1425_v45 = vlaneseq }
0x104a   :  { %v1210_v50 = vmul.f32 %v1667_v42, %v1204_v44 }
0x104c   :  { %v1216_v52 = vadd.f32 %v1668_v46, %v1210_v50  ;;  %v1428_v46 = vshrl.u32 %v1425_v45, 7 }
0x104e   :  { %v1217_v54 = vpack.c.bf16 %v1216_v52, %v1215_v51  ;;  %v1429_v55 = vmul.u32 8, %v1428_v46 }
0x1050   :  { %1858 = vmatmul.mubr.msk.bf16.vlgmr.msra.gmra.mxu1 %vm25_vm0, %v1217_v54  ;;  %v1426_v54 = vand.u32 127, %v1425_v45 }
0x1051   :  { %1875 = vmatprep.mubr.msk.bf16.mxu1 %vm2012_vm1, %v2011_v15 }
0x1052   :  { %vm1430_vm4 = vcmp.eq.s32.totalorder %v1426_v54, %v1429_v55 }
0x1110   :  { %v1276_v60 = vpop.f32.mrf.mxu1 }
0x1111   :  { %v1277_v61 = vadd.f32 %v1669_v59, %v1276_v60 }
0x1112   :  { %v1859_v62 = vpop.f32.mrf.mxu1 }
0x1113   :  { %v1283_v63 = vmul.f32 %v1277_v61, %v1277_v61 }
0x1114   :  { %v1279_v0 = vpop.f32.mrf.mxu1 }
0x1115   :  { %v1285_v1 = vmul.f32 %v1283_v63, %v1277_v61  ;;  %v1280_v2 = vadd.f32 %v1669_v59, %v1279_v0  ;;  %v1680_v59 = vld [vmem:[%s2385_s3 + $0x11] ss:$0 sm:$0xff]  ;;  %v1681_v63 = vsel %vm1430_vm4, 1.0, %v2011_v15 }
0x1116   :  { %v1860_v3 = vpop.f32.mrf.mxu1 }
0x1117   :  { %v1287_v4 = vmul.f32 0.044715, %v1285_v1  ;;  %v1284_v5 = vmul.f32 %v1280_v2, %v1280_v2  ;;  %v1433_v1 = vpack.c.bf16 %v1681_v63, %v1681_v63  ;;  %v1924_v3 = vld [vmem:[%s2384_s2 + $0xa0] sm:$0xff]  }
0x1119   :  { %v1289_v6 = vadd.f32 %v1287_v4, %v1277_v61  ;;  %v1286_v7 = vmul.f32 %v1284_v5, %v1280_v2 }
0x111b   :  { %v1291_v8 = vmul.f32 0.7978846, %v1289_v6  ;;  %v1288_v9 = vmul.f32 0.044715, %v1286_v7 }
0x111d   :  { %1979 = vtanh.f32 %v1291_v8  ;;  %v1290_v10 = vadd.f32 %v1288_v9, %v1280_v2  ;;  %v1925_v9 = vld [vmem:[%s2384_s2 + $0xb8] sm:$0xff]  }
0x111f   :  { %v1292_v11 = vmul.f32 0.7978846, %v1290_v10  ;;  %v1926_v10 = vld [vmem:[%s2384_s2 + $0xb0] sm:$0xff]  }
0x1121   :  { %1981 = vtanh.f32 %v1292_v11  ;;  %v1683_v11 = vld [vmem:[%s2385_s3 + $0x12] ss:$0 sm:$0xff] }
0x112a   :  { %v1980_v12 = vpop.eup %1979 }
0x112b   :  { %v1295_v13 = vadd.f32 1.0, %v1980_v12 }
0x112d   :  { %v1297_v16 = vmul.f32 0.5, %v1295_v13 }
0x112e   :  { %v1982_v14 = vpop.eup %1981 }
0x112f   :  { %v1296_v17 = vadd.f32 1.0, %v1982_v14  ;;  %v1299_v19 = vmul.f32 %v1297_v16, %v1277_v61 }
0x1131   :  { %v1298_v18 = vmul.f32 0.5, %v1296_v17 }
0x1133   :  { %v1300_v31 = vmul.f32 %v1298_v18, %v1280_v2  ;;  %v1923_v2 = vld [vmem:[%s2384_s2 + $0xa8] sm:$0xff]   ;;  %s2018_s2 = smov [#allocation2]  }
0x1134   :  { %s1617_s8 = sshll.u32 %s2018_s2, 4  ;;  %s1618_s8 = int_to_ptr.vmem [resolvable:$true] %s1617_s8 }
0x1135   :  { %v1301_v20 = vpack.c.bf16 %v1300_v31, %v1299_v19  ;;  %s1989_s10 = scalar_lea.vmem %s1618_s8, 32  ;;  %p1994_p1 = scmp.lt.s32.totalorder %s1618_s8, %s1618_s8 }
0x1136   :  { %p1990_p0 = scmp.ne.s32.totalorder %s1618_s8, %s1989_s10  ;;  %p1995_p2 = scmp.lt.s32.totalorder %s1989_s10, %s1989_s10 }
0x1137   :  { %1870 = vmatmul.mubr.msk.bf16.vlgmr.msra.gmra.mxu0 %vm659_vm3, %v1301_v20 }
0x1138   :  { %1891 = vmatprep.mubr.msk.bf16.mxu0 %vm2012_vm1, %v2011_v15  ;;  %1888 = vmatpush3.bf16.msra.mxu0 %v1925_v9  ;;  %p1996_p3 = por %p1995_p2, %p1994_p1 }
0x1139   :  { %1889 = vmatprep.subr.bf16.mxu0 %v2011_v15 }
0x113a   :  { %p1997_p4 = pnand %p1996_p3, %p1990_p0 }
0x113c   :  { %1890 = vmatpush3.bf16.msra.mxu0 %v1926_v10 }
0x11f7   :  { %v1376_v21 = vpop.f32.mrf.mxu0 }
0x11f8   :  { %v1377_v22 = vadd.f32 %v1673_v32, %v1376_v21 }
0x11f9   :  { %v1871_v23 = vpop.f32.mrf.mxu0 }
0x11fa   :  { %v1383_v24 = vadd.f32 %v1377_v22, %v1215_v51 }
0x11fb   :  { %v1379_v25 = vpop.f32.mrf.mxu0 }
0x11fc   :  { %v1380_v26 = vadd.f32 %v1673_v32, %v1379_v25  ;;  %v1387_v48 = vsel %vm25_vm0, %v1383_v24, 0.0 }
0x11fd   :  { %1388 = vadd.xlane.f32.xlu0 %v1387_v48  ;;  %v1872_v27 = vpop.f32.mrf.mxu0 }
0x11fe   :  { %v1384_v28 = vadd.f32 %v1380_v26, %v1216_v52  ;;  %v1679_v52 = vld [vmem:[%s2385_s3 + $0x10] ss:$0 sm:$0xff] }
0x1200   :  { %v1390_v29 = vsel %vm25_vm0, %v1384_v28, 0.0 }
0x1201   :  { %1391 = vadd.xlane.f32.xlu1 %v1390_v29 }
0x1286   :  { %v1389_v30 = vpop.xlane.xlu0 %1388 }
0x1287   :  { %v1393_v47 = vmul.f32 0.03125, %v1389_v30 }
0x1289   :  { %v1395_v53 = vsub.f32 %v1383_v24, %v1393_v47 }
0x128a   :  { %v1392_v49 = vpop.xlane.xlu1 %1391 }
0x128b   :  { %v1394_v33 = vmul.f32 0.03125, %v1392_v49  ;;  %v1397_v34 = vmul.f32 %v1395_v53, %v1395_v53 }
0x128d   :  { %v1396_v35 = vsub.f32 %v1384_v28, %v1394_v33  ;;  %v1399_v36 = vsel %vm25_vm0, %v1397_v34, 0.0 }
0x128e   :  { %1400 = vadd.xlane.f32.xlu0 %v1399_v36 }
0x128f   :  { %v1398_v37 = vmul.f32 %v1396_v35, %v1396_v35 }
0x1291   :  { %v1402_v38 = vsel %vm25_vm0, %v1398_v37, 0.0 }
0x1292   :  { %1403 = vadd.xlane.f32.xlu1 %v1402_v38 }
0x1317   :  { %v1401_v39 = vpop.xlane.xlu0 %1400 }
0x1318   :  { %v1405_v40 = vmul.f32 0.03125, %v1401_v39 }
0x131a   :  { %v1407_v41 = vadd.f32 1e-05, %v1405_v40 }
0x131b   :  { %v1404_v42 = vpop.xlane.xlu1 %1403 }
0x131c   :  { %1983 = vrsqrt.f32 %v1407_v41  ;;  %v1406_v43 = vmul.f32 0.03125, %v1404_v42 }
0x131e   :  { %v1408_v44 = vadd.f32 1e-05, %v1406_v43 }
0x1320   :  { %1985 = vrsqrt.f32 %v1408_v44 }
0x1329   :  { %v1984_v50 = vpop.eup %1983 }
0x132a   :  { %v1411_v51 = vmul.f32 %v1984_v50, %v1395_v53 }
0x132c   :  { %v1417_v58 = vmul.f32 %v1679_v52, %v1411_v51 }
0x132d   :  { %v1986_v56 = vpop.eup %1985 }
0x132e   :  { %v1412_v57 = vmul.f32 %v1986_v56, %v1396_v35  ;;  %v1423_v61 = vadd.f32 %v1680_v59, %v1417_v58 }
0x1330   :  { %v1418_v60 = vmul.f32 %v1679_v52, %v1412_v57 }
0x1332   :  { %v1424_v62 = vadd.f32 %v1680_v59, %v1418_v60 }
0x1334   :  { %v1434_v0 = vpack.c.bf16 %v1424_v62, %v1423_v61 }
0x1336   :  { %1874 = vmatpush3.bf16.msra.mxu1 %v1434_v0 }
0x1337   :  { %1879 = vmatprep.subr.bf16.mxu1 %v2011_v15 }
0x1339   :  { %1876 = vmatmul.mubr.msk.bf16.vlgmr.msra.gmra.mxu1 %vm135_vm2, %v1433_v1 }
0x133a   :  { %1880 = vmatpush3.bf16.msra.mxu1 %v1923_v2  ;;  %1883 = vmatprep.mubr.msk.bf16.mxu1 %vm2012_vm1, %v2011_v15 }
0x133b   :  { %1881 = vmatprep.subr.bf16.mxu1 %v2011_v15  ;;  %v1687_v15 = vld [vmem:[%s2385_s3 + $0x13] ss:$0 sm:$0xff] }
0x133e   :  { %1882 = vmatpush3.bf16.msra.mxu1 %v1924_v3 }
0x13f9   :  { %v1472_v4 = vpop.f32.mrf.mxu1 }
0x13fa   :  { %v1478_v5 = vpack.c.bf16 %v1472_v4, %v1472_v4 }
0x13fb   :  { %v1877_v6 = vpop.f32.mrf.mxu1 }
0x13fc   :  { %1884 = vmatmul.mubr.msk.bf16.vlgmr.msra.gmra.mxu1 %vm25_vm0, %v1478_v5 }
0x13fd   :  { %v1475_v7 = vpop.f32.mrf.mxu1 }
0x13ff   :  { %v1878_v8 = vpop.f32.mrf.mxu1 }
0x14bc   :  { %v1537_v12 = vpop.f32.mrf.mxu1 }
0x14bd   :  { %v1538_v13 = vadd.f32 %v1683_v11, %v1537_v12 }
0x14be   :  { %v1885_v14 = vpop.f32.mrf.mxu1 }
0x14bf   :  { %1987 = vtanh.f32 %v1538_v13 }
0x14c0   :  { %v1540_v16 = vpop.f32.mrf.mxu1 }
0x14c2   :  { %v1886_v17 = vpop.f32.mrf.mxu1 }
0x14cc   :  { %v1988_v18 = vpop.eup %1987 }
0x14cd   :  { %v1544_v19 = vpack.c.bf16 %v1988_v18, %v1988_v18 }
0x14cf   :  { %1892 = vmatmul.mubr.msk.bf16.vlgmr.msra.gmra.mxu0 %vm25_vm0, %v1544_v19 }
0x158f   :  { %v1603_v31 = vpop.f32.mrf.mxu0 }
0x1590   :  { %v1604_v20 = vadd.f32 %v1687_v15, %v1603_v31 }
0x1591   :  { %v1893_v32 = vpop.f32.mrf.mxu0 }
0x1592   :  { %1610 = vst.msk [vmem:[#allocation2] sm:$0x3] %vm1609_vm5, %v1604_v20 }
0x1593   :  { %v1606_v21 = vpop.f32.mrf.mxu0 }
0x1594   :  { %2000 = shalt.err (!%p1997_p4)
}
0x1595   :  { %1620 = dma.vmem_to_hbm [thread:$0]  %s1618_s8, 32, %s2386_s4, [#allocation3]   ;;  %v1894_v22 = vpop.f32.mrf.mxu0 }
0x1596   :  { %2009 = dma.done.wait [#allocation3], 32  }
0x1597   :  { %2010 = vsyncadd [#allocation3], 4294967264 }
0x1598   :  { %1624 = vsyncpa [#allocation3], 1 }

</bundles_post_ra>
